<compile_context>
chip_gen: v5e
topology: v5e:2x2
jax: 0.10.0
libtpu: 0.0.40
codegen_flags: <defaults>
</compile_context>

<pallas_src>
import jax
import jax.numpy as jnp
from jax.experimental import pallas as pl
from jax.experimental.pallas import tpu as pltpu


def fused_conv1x1_pad_kernel(x_ref, w_ref, bcol_ref, bsmem_ref, o_ref):
    # x_ref:     (B, Cin, H*W)  VMEM   unpadded pixels, lane-dense
    # w_ref:     (Cout, Cin)    VMEM   resident
    # bcol_ref:  (Cout, 1)      VMEM   resident (lane-broadcast add)
    # bsmem_ref: (Cout,)        SMEM   per-channel scalars for the border fill
    # o_ref:     (B, Cout, H+2, W+2)   padded output block
    B, Cin, HW = x_ref.shape
    Cout = w_ref.shape[0]
    Ho, Wo = o_ref.shape[2], o_ref.shape[3]
    H, W = Ho - 2, Wo - 2

    # Border of a 1x1 conv with padding=1 sees only zero padding -> exactly bias[c].
    # Fill the whole block with bias (scalar splat from SMEM), interior is
    # overwritten below.
    for c in range(Cout):
        o_ref[:, c, :, :] = jnp.full((B, Ho, Wo), bsmem_ref[c], dtype=o_ref.dtype)

    w = w_ref[...]       # (Cout, Cin)
    b = bcol_ref[...]    # (Cout, 1) -> broadcasts along the lane (pixel) axis

    for bi in range(B):
        # Lane-dense MXU matmul over unpadded pixels: (Cout, Cin) @ (Cin, H*W).
        y = jnp.dot(w, x_ref[bi], preferred_element_type=jnp.float32) + b
        # TODO(synk): torch adds randn_like noise that cancels algebraically
        # ((v1 - (v1 + n)) + (v1 + n) == v1); omitted — torch's RNG stream cannot
        # be reproduced on the HW PRNG anyway.
        # Scatter interior rows into the padded layout (static row loop).
        for r in range(H):
            o_ref[bi, :, r + 1, 1:W + 1] = y[:, r * W:(r + 1) * W].astype(o_ref.dtype)


def model_forward(x1, weight, bias):
    """x1: (N, Cin, H, W) f32. weight: (Cout, Cin, 1, 1). bias: (Cout,)."""
    N, Cin, H, W = x1.shape
    Cout = weight.shape[0]
    Ho, Wo, HW = H + 2, W + 2, H * W

    x_flat = x1.reshape(N, Cin, HW)        # contiguous reshape: no extra HBM pass
    w_mat = weight.reshape(Cout, Cin)
    b_col = bias.reshape(Cout, 1)

    # Whole problem fits VMEM on every generation; 2 grid steps over batch halves
    # (when N allows) so both v7x TensorCores get work, otherwise a single step.
    grid_n = 2 if (N >= 2 and N % 2 == 0) else 1
    b_blk = N // grid_n

    out = pl.pallas_call(
        fused_conv1x1_pad_kernel,
        out_shape=jax.ShapeDtypeStruct((N, Cout, Ho, Wo), jnp.float32),
        grid=(grid_n,),
        in_specs=[
            pl.BlockSpec((b_blk, Cin, HW), lambda g: (g, 0, 0)),
            pl.BlockSpec((Cout, Cin), lambda g: (0, 0)),         # resident weights
            pl.BlockSpec((Cout, 1), lambda g: (0, 0)),           # resident bias (VMEM)
            pl.BlockSpec(memory_space=pltpu.MemorySpace.SMEM),   # bias scalars (SMEM)
        ],
        out_specs=pl.BlockSpec((b_blk, Cout, Ho, Wo), lambda g: (g, 0, 0, 0)),
        compiler_params=pltpu.CompilerParams(
            dimension_semantics=("parallel",)),
    )(x_flat, w_mat, b_col, bias)

    return out


if __name__ == "__main__":
    key = jax.random.PRNGKey(0)
    k_x, k_w, k_b = jax.random.split(key, 3)

    # Cin=32 / Cout=16 are fixed by the conv definition; batch/spatial shrunk from
    # the original (10, 32, 32) to (2, 16, 16) for the demo.
    N, Cin, H, W = 2, 32, 16, 16
    Cout = 16

    x1 = jax.random.normal(k_x, (N, Cin, H, W), dtype=jnp.float32)
    weight = jax.random.normal(k_w, (Cout, Cin, 1, 1), dtype=jnp.float32) * 0.1
    bias = jax.random.normal(k_b, (Cout,), dtype=jnp.float32) * 0.1

    out = jax.jit(model_forward)(x1, weight, bias)
    out = jax.block_until_ready(out)

    assert out.shape == (N, Cout, H + 2, W + 2), out.shape
    assert out.dtype == jnp.float32

    # Reference: conv with padding=1 -> interior = w @ x + bias, border = bias.
    # ((v1 - other) + other == v1, so the expected output is just v1.)
    w_mat = weight.reshape(Cout, Cin)
    interior = jnp.einsum("oc,nchw->nohw", w_mat, x1,
                          precision=jax.lax.Precision.HIGHEST) \
        + bias.reshape(1, Cout, 1, 1)
    ref = jnp.broadcast_to(bias.reshape(1, Cout, 1, 1), (N, Cout, H + 2, W + 2))
    ref = ref.at[:, :, 1:-1, 1:-1].set(interior)
    assert jnp.allclose(out, ref, atol=1e-3, rtol=1e-3), \
        float(jnp.max(jnp.abs(out - ref)))

    print("KERNEL_OK")
</pallas_src>

<mosaic_0001>
module attributes {stable_mosaic.version = 11 : i64} {
  func.func @fused_conv1x1_pad_kernel(%arg0: i32, %arg1: memref<1x32x256xf32, #tpu.memory_space<vmem>>, %arg2: memref<16x32xf32, #tpu.memory_space<vmem>>, %arg3: memref<16x1xf32, #tpu.memory_space<vmem>>, %arg4: memref<16xf32, #tpu.memory_space<smem>>, %arg5: memref<1x16x18x18xf32, #tpu.memory_space<vmem>>) attributes {dimension_semantics = [#tpu.dimension_semantics<parallel>], iteration_bounds = array<i64: 2>, scalar_prefetch = 0 : i64, scratch_operands = 0 : i64, tpu.core_type = #tpu.core_type<tc>, window_params = [{transform_indices = @transform_0, window_bounds = array<i64: 1, 32, 256>}, {pipeline_mode = #tpu.pipeline_mode<synchronous>, transform_indices = @transform_1, window_bounds = array<i64: 16, 32>}, {pipeline_mode = #tpu.pipeline_mode<synchronous>, transform_indices = @transform_2, window_bounds = array<i64: 16, 1>}, {transform_indices = @transform_3, window_bounds = array<i64: 16>}, {transform_indices = @transform_4, window_bounds = array<i64: 1, 16, 18, 18>}]} {
    %c0 = arith.constant 0 : index
    %0 = memref.load %arg4[%c0] : memref<16xf32, #tpu.memory_space<smem>>
    %1 = vector.broadcast %0 : f32 to vector<1x18x18xf32>
    %c0_0 = arith.constant 0 : index
    %c0_1 = arith.constant 0 : index
    %c0_2 = arith.constant 0 : index
    %c0_3 = arith.constant 0 : index
    %2 = vector.load %arg5[%c0_0, %c0_1, %c0_2, %c0_3] : memref<1x16x18x18xf32, #tpu.memory_space<vmem>>, vector<1x1x18x18xf32>
    %3 = vector.shape_cast %2 : vector<1x1x18x18xf32> to vector<1x18x18xf32>
    %4 = vector.shape_cast %1 : vector<1x18x18xf32> to vector<1x1x18x18xf32>
    tpu.vector_store %arg5[%c0_0, %c0_1, %c0_2, %c0_3], %4 {strides = array<i32>} : memref<1x16x18x18xf32, #tpu.memory_space<vmem>>, vector<1x1x18x18xf32>,
    %c1 = arith.constant 1 : index
    %5 = memref.load %arg4[%c1] : memref<16xf32, #tpu.memory_space<smem>>
    %6 = vector.broadcast %5 : f32 to vector<1x18x18xf32>
    %c0_4 = arith.constant 0 : index
    %c1_5 = arith.constant 1 : index
    %c0_6 = arith.constant 0 : index
    %c0_7 = arith.constant 0 : index
    %7 = vector.load %arg5[%c0_4, %c1_5, %c0_6, %c0_7] : memref<1x16x18x18xf32, #tpu.memory_space<vmem>>, vector<1x1x18x18xf32>
    %8 = vector.shape_cast %7 : vector<1x1x18x18xf32> to vector<1x18x18xf32>
    %9 = vector.shape_cast %6 : vector<1x18x18xf32> to vector<1x1x18x18xf32>
    tpu.vector_store %arg5[%c0_4, %c1_5, %c0_6, %c0_7], %9 {strides = array<i32>} : memref<1x16x18x18xf32, #tpu.memory_space<vmem>>, vector<1x1x18x18xf32>,
    %c2 = arith.constant 2 : index
    %10 = memref.load %arg4[%c2] : memref<16xf32, #tpu.memory_space<smem>>
    %11 = vector.broadcast %10 : f32 to vector<1x18x18xf32>
    %c0_8 = arith.constant 0 : index
    %c2_9 = arith.constant 2 : index
    %c0_10 = arith.constant 0 : index
    %c0_11 = arith.constant 0 : index
    %12 = vector.load %arg5[%c0_8, %c2_9, %c0_10, %c0_11] : memref<1x16x18x18xf32, #tpu.memory_space<vmem>>, vector<1x1x18x18xf32>
    %13 = vector.shape_cast %12 : vector<1x1x18x18xf32> to vector<1x18x18xf32>
    %14 = vector.shape_cast %11 : vector<1x18x18xf32> to vector<1x1x18x18xf32>
    tpu.vector_store %arg5[%c0_8, %c2_9, %c0_10, %c0_11], %14 {strides = array<i32>} : memref<1x16x18x18xf32, #tpu.memory_space<vmem>>, vector<1x1x18x18xf32>,
    %c3 = arith.constant 3 : index
    %15 = memref.load %arg4[%c3] : memref<16xf32, #tpu.memory_space<smem>>
    %16 = vector.broadcast %15 : f32 to vector<1x18x18xf32>
    %c0_12 = arith.constant 0 : index
    %c3_13 = arith.constant 3 : index
    %c0_14 = arith.constant 0 : index
    %c0_15 = arith.constant 0 : index
    %17 = vector.load %arg5[%c0_12, %c3_13, %c0_14, %c0_15] : memref<1x16x18x18xf32, #tpu.memory_space<vmem>>, vector<1x1x18x18xf32>
    %18 = vector.shape_cast %17 : vector<1x1x18x18xf32> to vector<1x18x18xf32>
    %19 = vector.shape_cast %16 : vector<1x18x18xf32> to vector<1x1x18x18xf32>
    tpu.vector_store %arg5[%c0_12, %c3_13, %c0_14, %c0_15], %19 {strides = array<i32>} : memref<1x16x18x18xf32, #tpu.memory_space<vmem>>, vector<1x1x18x18xf32>,
    %c4 = arith.constant 4 : index
    %20 = memref.load %arg4[%c4] : memref<16xf32, #tpu.memory_space<smem>>
    %21 = vector.broadcast %20 : f32 to vector<1x18x18xf32>
    %c0_16 = arith.constant 0 : index
    %c4_17 = arith.constant 4 : index
    %c0_18 = arith.constant 0 : index
    %c0_19 = arith.constant 0 : index
    %22 = vector.load %arg5[%c0_16, %c4_17, %c0_18, %c0_19] : memref<1x16x18x18xf32, #tpu.memory_space<vmem>>, vector<1x1x18x18xf32>
    %23 = vector.shape_cast %22 : vector<1x1x18x18xf32> to vector<1x18x18xf32>
    %24 = vector.shape_cast %21 : vector<1x18x18xf32> to vector<1x1x18x18xf32>
    tpu.vector_store %arg5[%c0_16, %c4_17, %c0_18, %c0_19], %24 {strides = array<i32>} : memref<1x16x18x18xf32, #tpu.memory_space<vmem>>, vector<1x1x18x18xf32>,
    %c5 = arith.constant 5 : index
    %25 = memref.load %arg4[%c5] : memref<16xf32, #tpu.memory_space<smem>>
    %26 = vector.broadcast %25 : f32 to vector<1x18x18xf32>
    %c0_20 = arith.constant 0 : index
    %c5_21 = arith.constant 5 : index
    %c0_22 = arith.constant 0 : index
    %c0_23 = arith.constant 0 : index
    %27 = vector.load %arg5[%c0_20, %c5_21, %c0_22, %c0_23] : memref<1x16x18x18xf32, #tpu.memory_space<vmem>>, vector<1x1x18x18xf32>
    %28 = vector.shape_cast %27 : vector<1x1x18x18xf32> to vector<1x18x18xf32>
    %29 = vector.shape_cast %26 : vector<1x18x18xf32> to vector<1x1x18x18xf32>
    tpu.vector_store %arg5[%c0_20, %c5_21, %c0_22, %c0_23], %29 {strides = array<i32>} : memref<1x16x18x18xf32, #tpu.memory_space<vmem>>, vector<1x1x18x18xf32>,
    %c6 = arith.constant 6 : index
    %30 = memref.load %arg4[%c6] : memref<16xf32, #tpu.memory_space<smem>>
    %31 = vector.broadcast %30 : f32 to vector<1x18x18xf32>
    %c0_24 = arith.constant 0 : index
    %c6_25 = arith.constant 6 : index
    %c0_26 = arith.constant 0 : index
    %c0_27 = arith.constant 0 : index
    %32 = vector.load %arg5[%c0_24, %c6_25, %c0_26, %c0_27] : memref<1x16x18x18xf32, #tpu.memory_space<vmem>>, vector<1x1x18x18xf32>
    %33 = vector.shape_cast %32 : vector<1x1x18x18xf32> to vector<1x18x18xf32>
    %34 = vector.shape_cast %31 : vector<1x18x18xf32> to vector<1x1x18x18xf32>
    tpu.vector_store %arg5[%c0_24, %c6_25, %c0_26, %c0_27], %34 {strides = array<i32>} : memref<1x16x18x18xf32, #tpu.memory_space<vmem>>, vector<1x1x18x18xf32>,
    %c7 = arith.constant 7 : index
    %35 = memref.load %arg4[%c7] : memref<16xf32, #tpu.memory_space<smem>>
    %36 = vector.broadcast %35 : f32 to vector<1x18x18xf32>
    %c0_28 = arith.constant 0 : index
    %c7_29 = arith.constant 7 : index
    %c0_30 = arith.constant 0 : index
    %c0_31 = arith.constant 0 : index
    %37 = vector.load %arg5[%c0_28, %c7_29, %c0_30, %c0_31] : memref<1x16x18x18xf32, #tpu.memory_space<vmem>>, vector<1x1x18x18xf32>
    %38 = vector.shape_cast %37 : vector<1x1x18x18xf32> to vector<1x18x18xf32>
    %39 = vector.shape_cast %36 : vector<1x18x18xf32> to vector<1x1x18x18xf32>
    tpu.vector_store %arg5[%c0_28, %c7_29, %c0_30, %c0_31], %39 {strides = array<i32>} : memref<1x16x18x18xf32, #tpu.memory_space<vmem>>, vector<1x1x18x18xf32>,
    %c8 = arith.constant 8 : index
    %40 = memref.load %arg4[%c8] : memref<16xf32, #tpu.memory_space<smem>>
    %41 = vector.broadcast %40 : f32 to vector<1x18x18xf32>
    %c0_32 = arith.constant 0 : index
    %c8_33 = arith.constant 8 : index
    %c0_34 = arith.constant 0 : index
    %c0_35 = arith.constant 0 : index
    %42 = vector.load %arg5[%c0_32, %c8_33, %c0_34, %c0_35] : memref<1x16x18x18xf32, #tpu.memory_space<vmem>>, vector<1x1x18x18xf32>
    %43 = vector.shape_cast %42 : vector<1x1x18x18xf32> to vector<1x18x18xf32>
    %44 = vector.shape_cast %41 : vector<1x18x18xf32> to vector<1x1x18x18xf32>
    tpu.vector_store %arg5[%c0_32, %c8_33, %c0_34, %c0_35], %44 {strides = array<i32>} : memref<1x16x18x18xf32, #tpu.memory_space<vmem>>, vector<1x1x18x18xf32>,
    %c9 = arith.constant 9 : index
    %45 = memref.load %arg4[%c9] : memref<16xf32, #tpu.memory_space<smem>>
    %46 = vector.broadcast %45 : f32 to vector<1x18x18xf32>
    %c0_36 = arith.constant 0 : index
    %c9_37 = arith.constant 9 : index
    %c0_38 = arith.constant 0 : index
    %c0_39 = arith.constant 0 : index
    %47 = vector.load %arg5[%c0_36, %c9_37, %c0_38, %c0_39] : memref<1x16x18x18xf32, #tpu.memory_space<vmem>>, vector<1x1x18x18xf32>
    %48 = vector.shape_cast %47 : vector<1x1x18x18xf32> to vector<1x18x18xf32>
    %49 = vector.shape_cast %46 : vector<1x18x18xf32> to vector<1x1x18x18xf32>
    tpu.vector_store %arg5[%c0_36, %c9_37, %c0_38, %c0_39], %49 {strides = array<i32>} : memref<1x16x18x18xf32, #tpu.memory_space<vmem>>, vector<1x1x18x18xf32>,
    %c10 = arith.constant 10 : index
    %50 = memref.load %arg4[%c10] : memref<16xf32, #tpu.memory_space<smem>>
    %51 = vector.broadcast %50 : f32 to vector<1x18x18xf32>
    %c0_40 = arith.constant 0 : index
    %c10_41 = arith.constant 10 : index
    %c0_42 = arith.constant 0 : index
    %c0_43 = arith.constant 0 : index
    %52 = vector.load %arg5[%c0_40, %c10_41, %c0_42, %c0_43] : memref<1x16x18x18xf32, #tpu.memory_space<vmem>>, vector<1x1x18x18xf32>
    %53 = vector.shape_cast %52 : vector<1x1x18x18xf32> to vector<1x18x18xf32>
    %54 = vector.shape_cast %51 : vector<1x18x18xf32> to vector<1x1x18x18xf32>
    tpu.vector_store %arg5[%c0_40, %c10_41, %c0_42, %c0_43], %54 {strides = array<i32>} : memref<1x16x18x18xf32, #tpu.memory_space<vmem>>, vector<1x1x18x18xf32>,
    %c11 = arith.constant 11 : index
    %55 = memref.load %arg4[%c11] : memref<16xf32, #tpu.memory_space<smem>>
    %56 = vector.broadcast %55 : f32 to vector<1x18x18xf32>
    %c0_44 = arith.constant 0 : index
    %c11_45 = arith.constant 11 : index
    %c0_46 = arith.constant 0 : index
    %c0_47 = arith.constant 0 : index
    %57 = vector.load %arg5[%c0_44, %c11_45, %c0_46, %c0_47] : memref<1x16x18x18xf32, #tpu.memory_space<vmem>>, vector<1x1x18x18xf32>
    %58 = vector.shape_cast %57 : vector<1x1x18x18xf32> to vector<1x18x18xf32>
    %59 = vector.shape_cast %56 : vector<1x18x18xf32> to vector<1x1x18x18xf32>
    tpu.vector_store %arg5[%c0_44, %c11_45, %c0_46, %c0_47], %59 {strides = array<i32>} : memref<1x16x18x18xf32, #tpu.memory_space<vmem>>, vector<1x1x18x18xf32>,
    %c12 = arith.constant 12 : index
    %60 = memref.load %arg4[%c12] : memref<16xf32, #tpu.memory_space<smem>>
    %61 = vector.broadcast %60 : f32 to vector<1x18x18xf32>
    %c0_48 = arith.constant 0 : index
    %c12_49 = arith.constant 12 : index
    %c0_50 = arith.constant 0 : index
    %c0_51 = arith.constant 0 : index
    %62 = vector.load %arg5[%c0_48, %c12_49, %c0_50, %c0_51] : memref<1x16x18x18xf32, #tpu.memory_space<vmem>>, vector<1x1x18x18xf32>
    %63 = vector.shape_cast %62 : vector<1x1x18x18xf32> to vector<1x18x18xf32>
    %64 = vector.shape_cast %61 : vector<1x18x18xf32> to vector<1x1x18x18xf32>
    tpu.vector_store %arg5[%c0_48, %c12_49, %c0_50, %c0_51], %64 {strides = array<i32>} : memref<1x16x18x18xf32, #tpu.memory_space<vmem>>, vector<1x1x18x18xf32>,
    %c13 = arith.constant 13 : index
    %65 = memref.load %arg4[%c13] : memref<16xf32, #tpu.memory_space<smem>>
    %66 = vector.broadcast %65 : f32 to vector<1x18x18xf32>
    %c0_52 = arith.constant 0 : index
    %c13_53 = arith.constant 13 : index
    %c0_54 = arith.constant 0 : index
    %c0_55 = arith.constant 0 : index
    %67 = vector.load %arg5[%c0_52, %c13_53, %c0_54, %c0_55] : memref<1x16x18x18xf32, #tpu.memory_space<vmem>>, vector<1x1x18x18xf32>
    %68 = vector.shape_cast %67 : vector<1x1x18x18xf32> to vector<1x18x18xf32>
    %69 = vector.shape_cast %66 : vector<1x18x18xf32> to vector<1x1x18x18xf32>
    tpu.vector_store %arg5[%c0_52, %c13_53, %c0_54, %c0_55], %69 {strides = array<i32>} : memref<1x16x18x18xf32, #tpu.memory_space<vmem>>, vector<1x1x18x18xf32>,
    %c14 = arith.constant 14 : index
    %70 = memref.load %arg4[%c14] : memref<16xf32, #tpu.memory_space<smem>>
    %71 = vector.broadcast %70 : f32 to vector<1x18x18xf32>
    %c0_56 = arith.constant 0 : index
    %c14_57 = arith.constant 14 : index
    %c0_58 = arith.constant 0 : index
    %c0_59 = arith.constant 0 : index
    %72 = vector.load %arg5[%c0_56, %c14_57, %c0_58, %c0_59] : memref<1x16x18x18xf32, #tpu.memory_space<vmem>>, vector<1x1x18x18xf32>
    %73 = vector.shape_cast %72 : vector<1x1x18x18xf32> to vector<1x18x18xf32>
    %74 = vector.shape_cast %71 : vector<1x18x18xf32> to vector<1x1x18x18xf32>
    tpu.vector_store %arg5[%c0_56, %c14_57, %c0_58, %c0_59], %74 {strides = array<i32>} : memref<1x16x18x18xf32, #tpu.memory_space<vmem>>, vector<1x1x18x18xf32>,
    %c15 = arith.constant 15 : index
    %75 = memref.load %arg4[%c15] : memref<16xf32, #tpu.memory_space<smem>>
    %76 = vector.broadcast %75 : f32 to vector<1x18x18xf32>
    %c0_60 = arith.constant 0 : index
    %c15_61 = arith.constant 15 : index
    %c0_62 = arith.constant 0 : index
    %c0_63 = arith.constant 0 : index
    %77 = vector.load %arg5[%c0_60, %c15_61, %c0_62, %c0_63] : memref<1x16x18x18xf32, #tpu.memory_space<vmem>>, vector<1x1x18x18xf32>
    %78 = vector.shape_cast %77 : vector<1x1x18x18xf32> to vector<1x18x18xf32>
    %79 = vector.shape_cast %76 : vector<1x18x18xf32> to vector<1x1x18x18xf32>
    tpu.vector_store %arg5[%c0_60, %c15_61, %c0_62, %c0_63], %79 {strides = array<i32>} : memref<1x16x18x18xf32, #tpu.memory_space<vmem>>, vector<1x1x18x18xf32>,
    %c0_64 = arith.constant 0 : index
    %c0_65 = arith.constant 0 : index
    %80 = vector.load %arg2[%c0_64, %c0_65] : memref<16x32xf32, #tpu.memory_space<vmem>>, vector<16x32xf32>
    %c0_66 = arith.constant 0 : index
    %c0_67 = arith.constant 0 : index
    %81 = vector.load %arg3[%c0_66, %c0_67] : memref<16x1xf32, #tpu.memory_space<vmem>>, vector<16x1xf32>
    %c0_68 = arith.constant 0 : index
    %c0_69 = arith.constant 0 : index
    %c0_70 = arith.constant 0 : index
    %82 = vector.load %arg1[%c0_68, %c0_69, %c0_70] : memref<1x32x256xf32, #tpu.memory_space<vmem>>, vector<1x32x256xf32>
    %83 = vector.shape_cast %82 : vector<1x32x256xf32> to vector<32x256xf32>
    %cst = arith.constant dense<0.000000e+00> : vector<16x256xf32>
    %84 = tpu.matmul %80, %83, %cst {dimension_numbers = #tpu.dot_dimension_numbers<[1], [0], [0], [1], [0, 0, 1, 1], [], []>} : vector<16x32xf32>, vector<32x256xf32>, vector<16x256xf32> -> vector<16x256xf32>
    %85 = vector.broadcast %81 : vector<16x1xf32> to vector<16x256xf32>
    %86 = arith.addf %84, %85 : vector<16x256xf32>
    %87 = vector.extract_strided_slice %86 {offsets = [0, 0], sizes = [16, 16], strides = [1, 1]} : vector<16x256xf32> to vector<16x16xf32>
    %c0_71 = arith.constant 0 : index
    %c0_72 = arith.constant 0 : index
    %c1_73 = arith.constant 1 : index
    %c1_74 = arith.constant 1 : index
    %88 = vector.load %arg5[%c0_71, %c0_72, %c1_73, %c1_74] : memref<1x16x18x18xf32, #tpu.memory_space<vmem>>, vector<1x16x1x16xf32>
    %89 = vector.shape_cast %88 : vector<1x16x1x16xf32> to vector<16x16xf32>
    %90 = vector.shape_cast %87 : vector<16x16xf32> to vector<1x16x1x16xf32>
    tpu.vector_store %arg5[%c0_71, %c0_72, %c1_73, %c1_74], %90 {strides = array<i32>} : memref<1x16x18x18xf32, #tpu.memory_space<vmem>>, vector<1x16x1x16xf32>,
    %91 = vector.extract_strided_slice %86 {offsets = [0, 16], sizes = [16, 16], strides = [1, 1]} : vector<16x256xf32> to vector<16x16xf32>
    %c0_75 = arith.constant 0 : index
    %c0_76 = arith.constant 0 : index
    %c2_77 = arith.constant 2 : index
    %c1_78 = arith.constant 1 : index
    %92 = vector.load %arg5[%c0_75, %c0_76, %c2_77, %c1_78] : memref<1x16x18x18xf32, #tpu.memory_space<vmem>>, vector<1x16x1x16xf32>
    %93 = vector.shape_cast %92 : vector<1x16x1x16xf32> to vector<16x16xf32>
    %94 = vector.shape_cast %91 : vector<16x16xf32> to vector<1x16x1x16xf32>
    tpu.vector_store %arg5[%c0_75, %c0_76, %c2_77, %c1_78], %94 {strides = array<i32>} : memref<1x16x18x18xf32, #tpu.memory_space<vmem>>, vector<1x16x1x16xf32>,
    %95 = vector.extract_strided_slice %86 {offsets = [0, 32], sizes = [16, 16], strides = [1, 1]} : vector<16x256xf32> to vector<16x16xf32>
    %c0_79 = arith.constant 0 : index
    %c0_80 = arith.constant 0 : index
    %c3_81 = arith.constant 3 : index
    %c1_82 = arith.constant 1 : index
    %96 = vector.load %arg5[%c0_79, %c0_80, %c3_81, %c1_82] : memref<1x16x18x18xf32, #tpu.memory_space<vmem>>, vector<1x16x1x16xf32>
    %97 = vector.shape_cast %96 : vector<1x16x1x16xf32> to vector<16x16xf32>
    %98 = vector.shape_cast %95 : vector<16x16xf32> to vector<1x16x1x16xf32>
    tpu.vector_store %arg5[%c0_79, %c0_80, %c3_81, %c1_82], %98 {strides = array<i32>} : memref<1x16x18x18xf32, #tpu.memory_space<vmem>>, vector<1x16x1x16xf32>,
    %99 = vector.extract_strided_slice %86 {offsets = [0, 48], sizes = [16, 16], strides = [1, 1]} : vector<16x256xf32> to vector<16x16xf32>
    %c0_83 = arith.constant 0 : index
    %c0_84 = arith.constant 0 : index
    %c4_85 = arith.constant 4 : index
    %c1_86 = arith.constant 1 : index
    %100 = vector.load %arg5[%c0_83, %c0_84, %c4_85, %c1_86] : memref<1x16x18x18xf32, #tpu.memory_space<vmem>>, vector<1x16x1x16xf32>
    %101 = vector.shape_cast %100 : vector<1x16x1x16xf32> to vector<16x16xf32>
    %102 = vector.shape_cast %99 : vector<16x16xf32> to vector<1x16x1x16xf32>
    tpu.vector_store %arg5[%c0_83, %c0_84, %c4_85, %c1_86], %102 {strides = array<i32>} : memref<1x16x18x18xf32, #tpu.memory_space<vmem>>, vector<1x16x1x16xf32>,
    %103 = vector.extract_strided_slice %86 {offsets = [0, 64], sizes = [16, 16], strides = [1, 1]} : vector<16x256xf32> to vector<16x16xf32>
    %c0_87 = arith.constant 0 : index
    %c0_88 = arith.constant 0 : index
    %c5_89 = arith.constant 5 : index
    %c1_90 = arith.constant 1 : index
    %104 = vector.load %arg5[%c0_87, %c0_88, %c5_89, %c1_90] : memref<1x16x18x18xf32, #tpu.memory_space<vmem>>, vector<1x16x1x16xf32>
    %105 = vector.shape_cast %104 : vector<1x16x1x16xf32> to vector<16x16xf32>
    %106 = vector.shape_cast %103 : vector<16x16xf32> to vector<1x16x1x16xf32>
    tpu.vector_store %arg5[%c0_87, %c0_88, %c5_89, %c1_90], %106 {strides = array<i32>} : memref<1x16x18x18xf32, #tpu.memory_space<vmem>>, vector<1x16x1x16xf32>,
    %107 = vector.extract_strided_slice %86 {offsets = [0, 80], sizes = [16, 16], strides = [1, 1]} : vector<16x256xf32> to vector<16x16xf32>
    %c0_91 = arith.constant 0 : index
    %c0_92 = arith.constant 0 : index
    %c6_93 = arith.constant 6 : index
    %c1_94 = arith.constant 1 : index
    %108 = vector.load %arg5[%c0_91, %c0_92, %c6_93, %c1_94] : memref<1x16x18x18xf32, #tpu.memory_space<vmem>>, vector<1x16x1x16xf32>
    %109 = vector.shape_cast %108 : vector<1x16x1x16xf32> to vector<16x16xf32>
    %110 = vector.shape_cast %107 : vector<16x16xf32> to vector<1x16x1x16xf32>
    tpu.vector_store %arg5[%c0_91, %c0_92, %c6_93, %c1_94], %110 {strides = array<i32>} : memref<1x16x18x18xf32, #tpu.memory_space<vmem>>, vector<1x16x1x16xf32>,
    %111 = vector.extract_strided_slice %86 {offsets = [0, 96], sizes = [16, 16], strides = [1, 1]} : vector<16x256xf32> to vector<16x16xf32>
    %c0_95 = arith.constant 0 : index
    %c0_96 = arith.constant 0 : index
    %c7_97 = arith.constant 7 : index
    %c1_98 = arith.constant 1 : index
    %112 = vector.load %arg5[%c0_95, %c0_96, %c7_97, %c1_98] : memref<1x16x18x18xf32, #tpu.memory_space<vmem>>, vector<1x16x1x16xf32>
    %113 = vector.shape_cast %112 : vector<1x16x1x16xf32> to vector<16x16xf32>
    %114 = vector.shape_cast %111 : vector<16x16xf32> to vector<1x16x1x16xf32>
    tpu.vector_store %arg5[%c0_95, %c0_96, %c7_97, %c1_98], %114 {strides = array<i32>} : memref<1x16x18x18xf32, #tpu.memory_space<vmem>>, vector<1x16x1x16xf32>,
    %115 = vector.extract_strided_slice %86 {offsets = [0, 112], sizes = [16, 16], strides = [1, 1]} : vector<16x256xf32> to vector<16x16xf32>
    %c0_99 = arith.constant 0 : index
    %c0_100 = arith.constant 0 : index
    %c8_101 = arith.constant 8 : index
    %c1_102 = arith.constant 1 : index
    %116 = vector.load %arg5[%c0_99, %c0_100, %c8_101, %c1_102] : memref<1x16x18x18xf32, #tpu.memory_space<vmem>>, vector<1x16x1x16xf32>
    %117 = vector.shape_cast %116 : vector<1x16x1x16xf32> to vector<16x16xf32>
    %118 = vector.shape_cast %115 : vector<16x16xf32> to vector<1x16x1x16xf32>
    tpu.vector_store %arg5[%c0_99, %c0_100, %c8_101, %c1_102], %118 {strides = array<i32>} : memref<1x16x18x18xf32, #tpu.memory_space<vmem>>, vector<1x16x1x16xf32>,
    %119 = vector.extract_strided_slice %86 {offsets = [0, 128], sizes = [16, 16], strides = [1, 1]} : vector<16x256xf32> to vector<16x16xf32>
    %c0_103 = arith.constant 0 : index
    %c0_104 = arith.constant 0 : index
    %c9_105 = arith.constant 9 : index
    %c1_106 = arith.constant 1 : index
    %120 = vector.load %arg5[%c0_103, %c0_104, %c9_105, %c1_106] : memref<1x16x18x18xf32, #tpu.memory_space<vmem>>, vector<1x16x1x16xf32>
    %121 = vector.shape_cast %120 : vector<1x16x1x16xf32> to vector<16x16xf32>
    %122 = vector.shape_cast %119 : vector<16x16xf32> to vector<1x16x1x16xf32>
    tpu.vector_store %arg5[%c0_103, %c0_104, %c9_105, %c1_106], %122 {strides = array<i32>} : memref<1x16x18x18xf32, #tpu.memory_space<vmem>>, vector<1x16x1x16xf32>,
    %123 = vector.extract_strided_slice %86 {offsets = [0, 144], sizes = [16, 16], strides = [1, 1]} : vector<16x256xf32> to vector<16x16xf32>
    %c0_107 = arith.constant 0 : index
    %c0_108 = arith.constant 0 : index
    %c10_109 = arith.constant 10 : index
    %c1_110 = arith.constant 1 : index
    %124 = vector.load %arg5[%c0_107, %c0_108, %c10_109, %c1_110] : memref<1x16x18x18xf32, #tpu.memory_space<vmem>>, vector<1x16x1x16xf32>
    %125 = vector.shape_cast %124 : vector<1x16x1x16xf32> to vector<16x16xf32>
    %126 = vector.shape_cast %123 : vector<16x16xf32> to vector<1x16x1x16xf32>
    tpu.vector_store %arg5[%c0_107, %c0_108, %c10_109, %c1_110], %126 {strides = array<i32>} : memref<1x16x18x18xf32, #tpu.memory_space<vmem>>, vector<1x16x1x16xf32>,
    %127 = vector.extract_strided_slice %86 {offsets = [0, 160], sizes = [16, 16], strides = [1, 1]} : vector<16x256xf32> to vector<16x16xf32>
    %c0_111 = arith.constant 0 : index
    %c0_112 = arith.constant 0 : index
    %c11_113 = arith.constant 11 : index
    %c1_114 = arith.constant 1 : index
    %128 = vector.load %arg5[%c0_111, %c0_112, %c11_113, %c1_114] : memref<1x16x18x18xf32, #tpu.memory_space<vmem>>, vector<1x16x1x16xf32>
    %129 = vector.shape_cast %128 : vector<1x16x1x16xf32> to vector<16x16xf32>
    %130 = vector.shape_cast %127 : vector<16x16xf32> to vector<1x16x1x16xf32>
    tpu.vector_store %arg5[%c0_111, %c0_112, %c11_113, %c1_114], %130 {strides = array<i32>} : memref<1x16x18x18xf32, #tpu.memory_space<vmem>>, vector<1x16x1x16xf32>,
    %131 = vector.extract_strided_slice %86 {offsets = [0, 176], sizes = [16, 16], strides = [1, 1]} : vector<16x256xf32> to vector<16x16xf32>
    %c0_115 = arith.constant 0 : index
    %c0_116 = arith.constant 0 : index
    %c12_117 = arith.constant 12 : index
    %c1_118 = arith.constant 1 : index
    %132 = vector.load %arg5[%c0_115, %c0_116, %c12_117, %c1_118] : memref<1x16x18x18xf32, #tpu.memory_space<vmem>>, vector<1x16x1x16xf32>
    %133 = vector.shape_cast %132 : vector<1x16x1x16xf32> to vector<16x16xf32>
    %134 = vector.shape_cast %131 : vector<16x16xf32> to vector<1x16x1x16xf32>
    tpu.vector_store %arg5[%c0_115, %c0_116, %c12_117, %c1_118], %134 {strides = array<i32>} : memref<1x16x18x18xf32, #tpu.memory_space<vmem>>, vector<1x16x1x16xf32>,
    %135 = vector.extract_strided_slice %86 {offsets = [0, 192], sizes = [16, 16], strides = [1, 1]} : vector<16x256xf32> to vector<16x16xf32>
    %c0_119 = arith.constant 0 : index
    %c0_120 = arith.constant 0 : index
    %c13_121 = arith.constant 13 : index
    %c1_122 = arith.constant 1 : index
    %136 = vector.load %arg5[%c0_119, %c0_120, %c13_121, %c1_122] : memref<1x16x18x18xf32, #tpu.memory_space<vmem>>, vector<1x16x1x16xf32>
    %137 = vector.shape_cast %136 : vector<1x16x1x16xf32> to vector<16x16xf32>
    %138 = vector.shape_cast %135 : vector<16x16xf32> to vector<1x16x1x16xf32>
    tpu.vector_store %arg5[%c0_119, %c0_120, %c13_121, %c1_122], %138 {strides = array<i32>} : memref<1x16x18x18xf32, #tpu.memory_space<vmem>>, vector<1x16x1x16xf32>,
    %139 = vector.extract_strided_slice %86 {offsets = [0, 208], sizes = [16, 16], strides = [1, 1]} : vector<16x256xf32> to vector<16x16xf32>
    %c0_123 = arith.constant 0 : index
    %c0_124 = arith.constant 0 : index
    %c14_125 = arith.constant 14 : index
    %c1_126 = arith.constant 1 : index
    %140 = vector.load %arg5[%c0_123, %c0_124, %c14_125, %c1_126] : memref<1x16x18x18xf32, #tpu.memory_space<vmem>>, vector<1x16x1x16xf32>
    %141 = vector.shape_cast %140 : vector<1x16x1x16xf32> to vector<16x16xf32>
    %142 = vector.shape_cast %139 : vector<16x16xf32> to vector<1x16x1x16xf32>
    tpu.vector_store %arg5[%c0_123, %c0_124, %c14_125, %c1_126], %142 {strides = array<i32>} : memref<1x16x18x18xf32, #tpu.memory_space<vmem>>, vector<1x16x1x16xf32>,
    %143 = vector.extract_strided_slice %86 {offsets = [0, 224], sizes = [16, 16], strides = [1, 1]} : vector<16x256xf32> to vector<16x16xf32>
    %c0_127 = arith.constant 0 : index
    %c0_128 = arith.constant 0 : index
    %c15_129 = arith.constant 15 : index
    %c1_130 = arith.constant 1 : index
    %144 = vector.load %arg5[%c0_127, %c0_128, %c15_129, %c1_130] : memref<1x16x18x18xf32, #tpu.memory_space<vmem>>, vector<1x16x1x16xf32>
    %145 = vector.shape_cast %144 : vector<1x16x1x16xf32> to vector<16x16xf32>
    %146 = vector.shape_cast %143 : vector<16x16xf32> to vector<1x16x1x16xf32>
    tpu.vector_store %arg5[%c0_127, %c0_128, %c15_129, %c1_130], %146 {strides = array<i32>} : memref<1x16x18x18xf32, #tpu.memory_space<vmem>>, vector<1x16x1x16xf32>,
    %147 = vector.extract_strided_slice %86 {offsets = [0, 240], sizes = [16, 16], strides = [1, 1]} : vector<16x256xf32> to vector<16x16xf32>
    %c0_131 = arith.constant 0 : index
    %c0_132 = arith.constant 0 : index
    %c16 = arith.constant 16 : index
    %c1_133 = arith.constant 1 : index
    %148 = vector.load %arg5[%c0_131, %c0_132, %c16, %c1_133] : memref<1x16x18x18xf32, #tpu.memory_space<vmem>>, vector<1x16x1x16xf32>
    %149 = vector.shape_cast %148 : vector<1x16x1x16xf32> to vector<16x16xf32>
    %150 = vector.shape_cast %147 : vector<16x16xf32> to vector<1x16x1x16xf32>
    tpu.vector_store %arg5[%c0_131, %c0_132, %c16, %c1_133], %150 {strides = array<i32>} : memref<1x16x18x18xf32, #tpu.memory_space<vmem>>, vector<1x16x1x16xf32>,
    return
  }
  func.func @transform_0(%arg0: i32) -> (i32, i32, i32) {
    %c0_i32 = arith.constant 0 : i32
    %c0_i32_0 = arith.constant 0 : i32
    %c0_i32_1 = arith.constant 0 : i32
    return %arg0, %c0_i32, %c0_i32_0 : i32, i32, i32
  }
  func.func @transform_1(%arg0: i32) -> (i32, i32) {
    %c0_i32 = arith.constant 0 : i32
    %c0_i32_0 = arith.constant 0 : i32
    %c0_i32_1 = arith.constant 0 : i32
    return %c0_i32, %c0_i32_0 : i32, i32
  }
  func.func @transform_2(%arg0: i32) -> (i32, i32) {
    %c0_i32 = arith.constant 0 : i32
    %c0_i32_0 = arith.constant 0 : i32
    %c0_i32_1 = arith.constant 0 : i32
    return %c0_i32, %c0_i32_0 : i32, i32
  }
  func.func @transform_3(%arg0: i32) -> i32 {
    %c0_i32 = arith.constant 0 : i32
    %c0_i32_0 = arith.constant 0 : i32
    return %c0_i32 : i32
  }
  func.func @transform_4(%arg0: i32) -> (i32, i32, i32, i32) {
    %c0_i32 = arith.constant 0 : i32
    %c0_i32_0 = arith.constant 0 : i32
    %c0_i32_1 = arith.constant 0 : i32
    %c0_i32_2 = arith.constant 0 : i32
    return %arg0, %c0_i32, %c0_i32_0, %c0_i32_1 : i32, i32, i32, i32
  }
}

</mosaic_0001>

<bundles_post_ra>
// kernel: model_forward.1
= control target key start
LH: loop header
LB: loop body
LE: loop exit
PB: predicated region body
PF: predicated region fallthrough
CT: control target
= control target key end

     0   :  { %9 = vsyncpa [#allocation3], 0  ;;  %s1717_s15 = smov 0   ;;  %s3037_s0 = inlined_call_operand.vmem [shape: f32[2,32,256], index: 0, kind: input, shape index: {}]   ;;  %s3038_s1 = inlined_call_operand.vmem [shape: f32[16,32], index: 1, kind: input, shape index: {}]   ;;  %s3039_s2 = inlined_call_operand.vmem [shape: f32[16,1], index: 2, kind: input, shape index: {}]   ;;  %s3040_s3 = inlined_call_operand.vmem [shape: f32[16], index: 3, kind: input, shape index: {}]   ;;  %s3041_s4 = inlined_call_operand.vmem [shape: f32[2,16,18,18], index: 4, kind: output, shape index: {}]  }
   0x1 LB: > { %s1540_s16 = sadd.s32 4294967295, %s1680_s15   ;;  %p1542_p0 = scmp.ge.s32.totalorder %s1680_s15, 1  ;;  %s1680_s15 = sphi %s1717_s15, %s15_s15  }
   0x2   : > { %p135_p1 = scmp.lt.s32.totalorder %s1680_s15, 3  ;;  %s153_s19 = sshll.u32 %s3040_s3, 4  ;;  %s154_s19 = int_to_ptr.vmem [resolvable:$true] %s153_s19 }
   0x3   : > { %p1634_p3 = scmp.eq.s32.totalorder %s1540_s16, 0  ;;  %s1682_s20 = smov [#allocation2]  }
   0x4   : > { %p136_p2 = pnand %p1542_p0, %p135_p1 }
   0x6   : > { %p1630_p4 = pneg %p136_p2  ;;  %174 = sbr.rel (%p136_p2) target bundleno = 955 (0x3bb), region = 36 }
   0x8   : > { %p1631_p5 = pnand %p1634_p3, %p1630_p4 }
   0xa   : > { %1633 = dma.vmem_to_smem (!%p1631_p5), %s154_s19, 16, %s1682_s20, [#allocation3]  }
   0xb   : > { %1675 = dma.done.wait (%p1634_p3), [#allocation3], 16  }
   0xc   : > { %1677 = vsyncadd (%p1634_p3), [#allocation3], 4294967280 }
   0xd   : > { %181 = sfence }
   0xe   : > { %p202_p6 = scmp.lt.s32.totalorder %s1540_s16, 1  ;;  %v311_v0 = vld [vmem:[%s3039_s2] sm:$0xff]  ;;  %v1683_v1 = vmov 0   ;;  %vm331_vm0 = vcmask 261120   ;;  %v310_v11 = vld [vmem:[%s3038_s1 + $0x8] sm:$0xff]  ;;  %s1684_s7 = smov 81  }
   0xf   : > { %1654 = vset.pattern.permute.xlu0 %v1683_v1  ;;  %v309_v10 = vld [vmem:[%s3038_s1] sm:$0xff]  ;;  %v312_v12 = vld [vmem:[%s3039_s2 + $0x8] sm:$0xff]  ;;  %s1685_s8 = smov 113   ;;  %s1686_s9 = smov 1   ;;  %vm214_vm1 = vcmask 146432   ;;  %vm464_vm2 = vcmask 131080  }
  0x10   : > { %s3043_s16 = smov (!%p202_p6, %s1540_s16), 1  ;;  %323 = vperm.xlu0 %1654, %v311_v0   ;;  %s1687_s10 = smov 97   ;;  %vm217_vm3 = vcmask 140288  }
  0x11   : > { %s1616_s23 = sshll.u32 %s3043_s16, 6  ;;  %s212_s11 = sld [smem:[#allocation2]] }
  0x12   : > { %s206_s26 = scalar_lea.vmem %s3037_s0, %s1616_s23  ;;  %s1625_s12 = smul.u32 384, %s3043_s16 }
  0x13   : > { %v319_v2 = vld [vmem:[%s206_s26 + $0x30] sm:$0xff]  ;;  %v320_v3 = vld [vmem:[%s206_s26 + $0x38] sm:$0xff]  ;;  %v317_v4 = vld [vmem:[%s206_s26 + $0x20] sm:$0xff]  ;;  %s1554_s16 = sld [smem:[#allocation2 + $0x2]]  ;;  %s1688_s27 = smov 65  }
  0x14   : > { %350 = vmatpush.msra.mxu0 %v319_v2  ;;  %1617 = vmatpush.msra.mxu2 %v319_v2  ;;  %v318_v5 = vld [vmem:[%s206_s26 + $0x28] sm:$0xff]  ;;  %v315_v6 = vld [vmem:[%s206_s26 + $0x10] sm:$0xff]  ;;  %v316_v7 = vld [vmem:[%s206_s26 + $0x18] sm:$0xff]  ;;  %s1811_s17 = scalar_lea.vmem %s3041_s4, %s1625_s12  ;;  %s1558_s18 = sld [smem:[#allocation2 + $0x3]] }
  0x15   : > { %373 = vmatpush.msra.mxu1 %v320_v3  ;;  %1621 = vmatpush.msra.mxu3 %v320_v3  ;;  %v313_v8 = vld [vmem:[%s206_s26] sm:$0xff]  ;;  %v314_v9 = vld [vmem:[%s206_s26 + $0x8] sm:$0xff]  ;;  %s1570_s19 = sld [smem:[#allocation2 + $0x6]]  ;;  %s1690_s12 = smov 33  }
  0x16   : > { %351 = vmatpush.msra.mxu0 %v317_v4  ;;  %1618 = vmatpush.msra.mxu2 %v317_v4  ;;  %s1562_s20 = sld [smem:[#allocation2 + $0x4]]  ;;  %s1691_s13 = smov 17  }
  0x17   : > { %374 = vmatpush.msra.mxu1 %v318_v5  ;;  %1622 = vmatpush.msra.mxu3 %v318_v5  ;;  %v1819_v31 = vstv %s212_s11  ;;  %s1574_s21 = sld [smem:[#allocation2 + $0x7]]  ;;  %s1689_s11 = smov 49  }
  0x18   : > { %352 = vmatpush.msra.mxu0 %v315_v6  ;;  %1619 = vmatpush.msra.mxu2 %v315_v6  ;;  %215 = vst.msk [vmem:[%s1811_s17] sm:$0xff] %vm214_vm1, %v1819_v31  ;;  %s1566_s22 = sld [smem:[#allocation2 + $0x5]] }
  0x19   : > { %375 = vmatpush.msra.mxu1 %v316_v7  ;;  %1623 = vmatpush.msra.mxu3 %v316_v7  ;;  %216 = vst.msk [vmem:[%s1811_s17 + $0x8] sm:$0xff] %vm214_vm1, %v1819_v31  ;;  %v1833_v32 = vstv %s1554_s16  ;;  %s1550_s23 = sld [smem:[#allocation2 + $0x1]] }
  0x1a   : > { %353 = vmatpush.msra.mxu0 %v313_v8  ;;  %1620 = vmatpush.msra.mxu2 %v313_v8  ;;  %1555 = vst.msk [vmem:[%s1811_s17 + $0x30] sm:$0xff] %vm214_vm1, %v1833_v32  ;;  %v1849_v35 = vstv %s1558_s18  ;;  %s1578_s24 = sld [smem:[#allocation2 + $0x8]] }
  0x1b   : > { %376 = vmatpush.msra.mxu1 %v314_v9  ;;  %1624 = vmatpush.msra.mxu3 %v314_v9  ;;  %1556 = vst.msk [vmem:[%s1811_s17 + $0x38] sm:$0xff] %vm214_vm1, %v1833_v32  ;;  %v1866_v39 = vstv %s1570_s19  ;;  %s1582_s25 = sld [smem:[#allocation2 + $0x9]] }
  0x1c   : > { %1610 = vmatmul.msk.f32.vlgmr.msra.gmra.mxu0 %vm331_vm0, %v309_v10  ;;  %1611 = vmatmul.msk.f32.vlgmr.msra.gmra.mxu2 %vm331_vm0, %v310_v11  ;;  %1559 = vst.msk [vmem:[%s1811_s17 + $0x48] sm:$0xff] %vm214_vm1, %v1849_v35  ;;  %v1884_v44 = vstv %s1562_s20  ;;  %s1594_s26 = sld [smem:[#allocation2 + $0xc]] }
  0x1d   : > { %1612 = vmatmul.msk.f32.vlgmr.msra.gmra.mxu1 %vm331_vm0, %v309_v10  ;;  %1613 = vmatmul.msk.f32.vlgmr.msra.gmra.mxu3 %vm331_vm0, %v310_v11  ;;  %1560 = vst.msk [vmem:[%s1811_s17 + $0x50] sm:$0xff] %vm214_vm1, %v1849_v35  ;;  %v1902_v47 = vstv %s1574_s21  ;;  %s1586_s28 = sld [smem:[#allocation2 + $0xa]] }
  0x1e   : > { %328 = vperm.xlu0 %1654, %v312_v12   ;;  %1571 = vst.msk [vmem:[%s1811_s17 + $0x90] sm:$0xff] %vm214_vm1, %v1866_v39  ;;  %v1909_v51 = vstv %s1566_s22  ;;  %s1606_s29 = sld [smem:[#allocation2 + $0xf]] }
  0x1f   : > { %1572 = vst.msk [vmem:[%s1811_s17 + $0x98] sm:$0xff] %vm214_vm1, %v1866_v39  ;;  %v1914_v52 = vstv %s1550_s23  ;;  %s1598_s30 = sld [smem:[#allocation2 + $0xd]] }
  0x20   : > { %1563 = vst.msk [vmem:[%s1811_s17 + $0x60] sm:$0xff] %vm214_vm1, %v1884_v44  ;;  %v2000_v11 = vstv %s1578_s24  ;;  %s1590_s5 = sld [smem:[#allocation2 + $0xb]] }
  0x21   : > { %1564 = vst.msk [vmem:[%s1811_s17 + $0x68] sm:$0xff] %vm214_vm1, %v1884_v44  ;;  %s1602_s6 = sld [smem:[#allocation2 + $0xe]] }
  0x22   : > { %1575 = vst.msk [vmem:[%s1811_s17 + $0xa8] sm:$0xff] %vm214_vm1, %v1902_v47 }
  0x23   : > { %1576 = vst.msk [vmem:[%s1811_s17 + $0xb0] sm:$0xff] %vm214_vm1, %v1902_v47 }
  0x24   : > { %1567 = vst.msk [vmem:[%s1811_s17 + $0x78] sm:$0xff] %vm214_vm1, %v1909_v51 }
  0x25   : > { %1568 = vst.msk [vmem:[%s1811_s17 + $0x80] sm:$0xff] %vm214_vm1, %v1909_v51 }
  0x26   : > { %1551 = vst.msk [vmem:[%s1811_s17 + $0x18] sm:$0xff] %vm214_vm1, %v1914_v52 }
  0x27   : > { %1552 = vst.msk [vmem:[%s1811_s17 + $0x20] sm:$0xff] %vm214_vm1, %v1914_v52 }
  0x28   : > { %1579 = vst.msk [vmem:[%s1811_s17 + $0xc0] sm:$0xff] %vm214_vm1, %v2000_v11 }
  0x29   : > { %1580 = vst.msk [vmem:[%s1811_s17 + $0xc8] sm:$0xff] %vm214_vm1, %v2000_v11 }
  0x2a   : > { %218 = vst.msk [vmem:[%s1811_s17 + $0x10] sm:$0x3] %vm217_vm3, %v1819_v31 }
  0x2b   : > { %1553 = vst.msk [vmem:[%s1811_s17 + $0x28] sm:$0x3] %vm217_vm3, %v1914_v52 }
  0x2c   : > { %1557 = vst.msk [vmem:[%s1811_s17 + $0x40] sm:$0x3] %vm217_vm3, %v1833_v32 }
  0x2d   : > { %1561 = vst.msk [vmem:[%s1811_s17 + $0x58] sm:$0x3] %vm217_vm3, %v1849_v35 }
  0x2e   : > { %1565 = vst.msk [vmem:[%s1811_s17 + $0x70] sm:$0x3] %vm217_vm3, %v1884_v44 }
  0x2f   : > { %1569 = vst.msk [vmem:[%s1811_s17 + $0x88] sm:$0x3] %vm217_vm3, %v1909_v51 }
  0x30   : > { %1573 = vst.msk [vmem:[%s1811_s17 + $0xa0] sm:$0x3] %vm217_vm3, %v1866_v39 }
  0x31   : > { %1577 = vst.msk [vmem:[%s1811_s17 + $0xb8] sm:$0x3] %vm217_vm3, %v1902_v47 }
  0x32   : > { %1581 = vst.msk [vmem:[%s1811_s17 + $0xd0] sm:$0x3] %vm217_vm3, %v2000_v11 }
  0x82   : > { %v1746_v13 = vpop.permute.xlu0 %323 }
  0x90   : > { %v1845_v34 = vpop.permute.xlu0 %328 }
  0x99   : > { %v355_v14 = vpop.f32.mrf.mxu0 }
  0x9a   : > { %v356_v15 = vadd.f32 %v355_v14, %v1746_v13 }
  0x9c   : > { %v1749_v16 = vperm.slane %v356_v15, 0  ;;  %v389_v17 = vrot.slane %v356_v15, 4  ;;  %v387_v18 = vrot.slane %v356_v15, 2  ;;  %v392_v21 = vrot.slane %v356_v15, 7 }
  0x9d   : > { %v388_v22 = vrot.slane %v356_v15, 3  ;;  %v386_v23 = vrot.slane %v356_v15, 1  ;;  %v391_v27 = vrot.slane %v356_v15, 6  ;;  %v390_v28 = vrot.slane %v356_v15, 5 }
  0x9e   : > { %609 = vrot.lane.b32.xlu2 %v1749_v16, %s1684_s7  ;;  %481 = vrot.lane.b32.xlu0 %v1749_v16, %s1685_s8  ;;  %v1757_v19 = vperm.slane %v389_v17, 0  ;;  %v1759_v20 = vperm.slane %v387_v18, 0  ;;  %v1767_v24 = vperm.slane %v392_v21, 0  ;;  %v2020_v17 = vstv %s1582_s25 }
  0x9f   : > { %416 = vrot.lane.b32.xlu1 %v1749_v16, %s1686_s9  ;;  %v1769_v25 = vperm.slane %v388_v22, 0  ;;  %v1771_v26 = vperm.slane %v386_v23, 0  ;;  %v1779_v29 = vperm.slane %v391_v27, 0  ;;  %v1781_v30 = vperm.slane %v390_v28, 0  ;;  %v358_v33 = vpop.f32.mrf.mxu2  ;;  %1583 = vst.msk [vmem:[%s1811_s17 + $0xd8] sm:$0xff] %vm214_vm1, %v2020_v17 }
  0xa0   : > { %v359_v36 = vadd.f32 %v358_v33, %v1845_v34  ;;  %1584 = vst.msk [vmem:[%s1811_s17 + $0xe0] sm:$0xff] %vm214_vm1, %v2020_v17  ;;  %v2040_v23 = vstv %s1594_s26  ;;  %v2058_v27 = vstv %s1586_s28 }
  0xa1   : > { %1595 = vst.msk [vmem:[%s1811_s17 + $0x120] sm:$0xff] %vm214_vm1, %v2040_v23 }
  0xa2   : > { %v1858_v37 = vperm.slane %v359_v36, 0  ;;  %v394_v38 = vrot.slane %v359_v36, 2  ;;  %v397_v42 = vrot.slane %v359_v36, 5  ;;  %v393_v43 = vrot.slane %v359_v36, 1  ;;  %1596 = vst.msk [vmem:[%s1811_s17 + $0x128] sm:$0xff] %vm214_vm1, %v2040_v23 }
  0xa3   : > { %v396_v49 = vrot.slane %v359_v36, 4  ;;  %v395_v50 = vrot.slane %v359_v36, 3  ;;  %v399_v56 = vrot.slane %v359_v36, 7  ;;  %v398_v57 = vrot.slane %v359_v36, 6  ;;  %1587 = vst.msk [vmem:[%s1811_s17 + $0xf0] sm:$0xff] %vm214_vm1, %v2058_v27 }
  0xa4   : > { %v1874_v40 = vperm.slane %v394_v38, 0  ;;  %v1892_v45 = vperm.slane %v397_v42, 0  ;;  %v1894_v46 = vperm.slane %v393_v43, 0  ;;  %v2067_v38 = vstv %s1606_s29  ;;  %1588 = vst.msk [vmem:[%s1811_s17 + $0xf8] sm:$0xff] %vm214_vm1, %v2058_v27 }
  0xa5   : > { %v1919_v53 = vperm.slane %v396_v49, 0  ;;  %v1924_v54 = vperm.slane %v395_v50, 0  ;;  %v1940_v58 = vperm.slane %v399_v56, 0  ;;  %v1942_v59 = vperm.slane %v398_v57, 0  ;;  %1607 = vst.msk [vmem:[%s1811_s17 + $0x168] sm:$0xff] %vm214_vm1, %v2067_v38 }
  0xa6   : > { %424 = vrot.lane.b32.xlu0 %v1757_v19, %s1686_s9  ;;  %420 = vrot.lane.b32.xlu2 %v1759_v20, %s1686_s9  ;;  %1608 = vst.msk [vmem:[%s1811_s17 + $0x170] sm:$0xff] %vm214_vm1, %v2067_v38  ;;  %v2095_v49 = vstv %s1590_s5 }
  0xa7   : > { %545 = vrot.lane.b32.xlu1 %v1749_v16, %s1687_s10  ;;  %1591 = vst.msk [vmem:[%s1811_s17 + $0x108] sm:$0xff] %vm214_vm1, %v2095_v49  ;;  %v2116_v57 = vstv %s1602_s6 }
  0xa8   : > { %1592 = vst.msk [vmem:[%s1811_s17 + $0x110] sm:$0xff] %vm214_vm1, %v2095_v49 }
  0xa9   : > { %1603 = vst.msk [vmem:[%s1811_s17 + $0x150] sm:$0xff] %vm214_vm1, %v2116_v57 }
  0xaa   : > { %1604 = vst.msk [vmem:[%s1811_s17 + $0x158] sm:$0xff] %vm214_vm1, %v2116_v57 }
  0xab   : > { %1585 = vst.msk [vmem:[%s1811_s17 + $0xe8] sm:$0x3] %vm217_vm3, %v2020_v17 }
  0xac   : > { %1589 = vst.msk [vmem:[%s1811_s17 + $0x100] sm:$0x3] %vm217_vm3, %v2058_v27 }
  0xad   : > { %1593 = vst.msk [vmem:[%s1811_s17 + $0x118] sm:$0x3] %vm217_vm3, %v2095_v49 }
  0xae   : > { %430 = vrot.lane.b32.xlu0 %v1767_v24, %s1686_s9  ;;  %422 = vrot.lane.b32.xlu2 %v1769_v25, %s1686_s9  ;;  %1597 = vst.msk [vmem:[%s1811_s17 + $0x130] sm:$0x3] %vm217_vm3, %v2040_v23 }
  0xaf   : > { %418 = vrot.lane.b32.xlu1 %v1771_v26, %s1686_s9  ;;  %1605 = vst.msk [vmem:[%s1811_s17 + $0x160] sm:$0x3] %vm217_vm3, %v2116_v57 }
  0xb0   : > { %1609 = vst.msk [vmem:[%s1811_s17 + $0x178] sm:$0x3] %vm217_vm3, %v2067_v38 }
  0xb6   : > { %487 = vrot.lane.b32.xlu0 %v1769_v25, %s1685_s8  ;;  %428 = vrot.lane.b32.xlu2 %v1779_v29, %s1686_s9 }
  0xb7   : > { %426 = vrot.lane.b32.xlu1 %v1781_v30, %s1686_s9 }
  0xbe   : > { %493 = vrot.lane.b32.xlu0 %v1779_v29, %s1685_s8  ;;  %485 = vrot.lane.b32.xlu2 %v1759_v20, %s1685_s8 }
  0xbf   : > { %483 = vrot.lane.b32.xlu1 %v1771_v26, %s1685_s8 }
  0xc6   : > { %549 = vrot.lane.b32.xlu0 %v1759_v20, %s1687_s10  ;;  %491 = vrot.lane.b32.xlu2 %v1781_v30, %s1685_s8 }
  0xc7   : > { %489 = vrot.lane.b32.xlu1 %v1757_v19, %s1685_s8 }
  0xce   : > { %555 = vrot.lane.b32.xlu0 %v1781_v30, %s1687_s10  ;;  %547 = vrot.lane.b32.xlu2 %v1771_v26, %s1687_s10 }
  0xcf   : > { %495 = vrot.lane.b32.xlu1 %v1767_v24, %s1685_s8 }
  0xd6   : > { %611 = vrot.lane.b32.xlu0 %v1771_v26, %s1684_s7  ;;  %553 = vrot.lane.b32.xlu2 %v1757_v19, %s1687_s10 }
  0xd7   : > { %551 = vrot.lane.b32.xlu1 %v1769_v25, %s1687_s10 }
  0xde   : > { %617 = vrot.lane.b32.xlu0 %v1757_v19, %s1684_s7  ;;  %559 = vrot.lane.b32.xlu2 %v1767_v24, %s1687_s10 }
  0xdf   : > { %557 = vrot.lane.b32.xlu1 %v1779_v29, %s1687_s10 }
  0xe6   : > { %623 = vrot.lane.b32.xlu0 %v1767_v24, %s1684_s7  ;;  %615 = vrot.lane.b32.xlu2 %v1769_v25, %s1684_s7 }
  0xe7   : > { %613 = vrot.lane.b32.xlu1 %v1759_v20, %s1684_s7 }
  0xee   : > { %561 = vrot.lane.b32.xlu0 %v1858_v37, %s1687_s10  ;;  %621 = vrot.lane.b32.xlu2 %v1779_v29, %s1684_s7 }
  0xef   : > { %619 = vrot.lane.b32.xlu1 %v1781_v30, %s1684_s7 }
  0xf6   : > { %436 = vrot.lane.b32.xlu0 %v1874_v40, %s1686_s9  ;;  %497 = vrot.lane.b32.xlu2 %v1858_v37, %s1685_s8 }
  0xf7   : > { %432 = vrot.lane.b32.xlu1 %v1858_v37, %s1686_s9 }
  0xf8   : > { %v610_v41 = vpop.permute.xlu2 %609 }
  0xf9   : > { %657 = vst.msk [vmem:[%s1811_s17 + $0x4] sm:$0x1] %vm464_vm2, %v610_v41  ;;  %v2086_v41 = vstv %s1598_s30 }
  0xfa   : > { %1599 = vst.msk [vmem:[%s1811_s17 + $0x138] sm:$0xff] %vm214_vm1, %v2086_v41 }
  0xfb   : > { %1600 = vst.msk [vmem:[%s1811_s17 + $0x140] sm:$0xff] %vm214_vm1, %v2086_v41 }
  0xfc   : > { %1601 = vst.msk [vmem:[%s1811_s17 + $0x148] sm:$0x3] %vm217_vm3, %v2086_v41 }
  0xfe   : > { %442 = vrot.lane.b32.xlu0 %v1892_v45, %s1686_s9  ;;  %434 = vrot.lane.b32.xlu2 %v1894_v46, %s1686_s9 }
  0xff   : > { %625 = vrot.lane.b32.xlu1 %v1858_v37, %s1684_s7 }
 0x100   : > { %v421_v48 = vpop.permute.xlu2 %420 }
 0x101   : > { %467 = vst.msk [vmem:[%s1811_s17 + $0x31] sm:$0x1] %vm464_vm2, %v421_v48 }
 0x106   : > { %499 = vrot.lane.b32.xlu0 %v1894_v46, %s1685_s8  ;;  %440 = vrot.lane.b32.xlu2 %v1919_v53, %s1686_s9 }
 0x107   : > { %438 = vrot.lane.b32.xlu1 %v1924_v54, %s1686_s9 }
 0x108   : > { %v423_v55 = vpop.permute.xlu2 %422 }
 0x109   : > { %468 = vst.msk [vmem:[%s1811_s17 + $0x49] sm:$0x1] %vm464_vm2, %v423_v55 }
 0x10e   : > { %505 = vrot.lane.b32.xlu0 %v1919_v53, %s1685_s8  ;;  %446 = vrot.lane.b32.xlu2 %v1940_v58, %s1686_s9 }
 0x10f   : > { %444 = vrot.lane.b32.xlu1 %v1942_v59, %s1686_s9 }
 0x110   : > { %v482_v60 = vpop.permute.xlu0 %481  ;;  %v429_v61 = vpop.permute.xlu2 %428 }
 0x111   : > { %529 = vst.msk [vmem:[%s1811_s17 + $0x2] sm:$0x1] %vm464_vm2, %v482_v60  ;;  %v417_v62 = vpop.permute.xlu1 %416 }
 0x112   : > { %465 = vst.msk [vmem:[%s1811_s17 + $0x1] sm:$0x1] %vm464_vm2, %v417_v62 }
 0x113   : > { %471 = vst.msk [vmem:[%s1811_s17 + $0x91] sm:$0x1] %vm464_vm2, %v429_v61 }
 0x116   : > { %511 = vrot.lane.b32.xlu0 %v1940_v58, %s1685_s8  ;;  %503 = vrot.lane.b32.xlu2 %v1924_v54, %s1685_s8 }
 0x117   : > { %501 = vrot.lane.b32.xlu1 %v1874_v40, %s1685_s8 }
 0x118   : > { %v425_v63 = vpop.permute.xlu0 %424  ;;  %v486_v0 = vpop.permute.xlu2 %485 }
 0x119   : > { %v546_v1 = vpop.permute.xlu1 %545  ;;  %469 = vst.msk [vmem:[%s1811_s17 + $0x61] sm:$0x1] %vm464_vm2, %v425_v63 }
 0x11a   : > { %593 = vst.msk [vmem:[%s1811_s17 + $0x3] sm:$0x1] %vm464_vm2, %v546_v1 }
 0x11b   : > { %531 = vst.msk [vmem:[%s1811_s17 + $0x32] sm:$0x1] %vm464_vm2, %v486_v0 }
 0x11e   : > { %567 = vrot.lane.b32.xlu0 %v1924_v54, %s1687_s10  ;;  %509 = vrot.lane.b32.xlu2 %v1942_v59, %s1685_s8 }
 0x11f   : > { %507 = vrot.lane.b32.xlu1 %v1892_v45, %s1685_s8 }
 0x120   : > { %v431_v2 = vpop.permute.xlu0 %430  ;;  %v492_v3 = vpop.permute.xlu2 %491 }
 0x121   : > { %472 = vst.msk [vmem:[%s1811_s17 + $0xa9] sm:$0x1] %vm464_vm2, %v431_v2  ;;  %v419_v4 = vpop.permute.xlu1 %418 }
 0x122   : > { %534 = vst.msk [vmem:[%s1811_s17 + $0x7a] sm:$0x1] %vm464_vm2, %v492_v3 }
 0x123   : > { %466 = vst.msk [vmem:[%s1811_s17 + $0x19] sm:$0x1] %vm464_vm2, %v419_v4 }
 0x126   : > { %573 = vrot.lane.b32.xlu0 %v1942_v59, %s1687_s10  ;;  %565 = vrot.lane.b32.xlu2 %v1874_v40, %s1687_s10 }
 0x127   : > { %563 = vrot.lane.b32.xlu1 %v1894_v46, %s1687_s10 }
 0x128   : > { %v488_v5 = vpop.permute.xlu0 %487  ;;  %v548_v6 = vpop.permute.xlu2 %547 }
 0x129   : > { %532 = vst.msk [vmem:[%s1811_s17 + $0x4a] sm:$0x1] %vm464_vm2, %v488_v5  ;;  %v427_v7 = vpop.permute.xlu1 %426 }
 0x12a   : > { %594 = vst.msk [vmem:[%s1811_s17 + $0x1b] sm:$0x1] %vm464_vm2, %v548_v6 }
 0x12b   : > { %470 = vst.msk [vmem:[%s1811_s17 + $0x79] sm:$0x1] %vm464_vm2, %v427_v7 }
 0x12e   : > { %629 = vrot.lane.b32.xlu0 %v1874_v40, %s1684_s7  ;;  %571 = vrot.lane.b32.xlu2 %v1892_v45, %s1687_s10 }
 0x12f   : > { %569 = vrot.lane.b32.xlu1 %v1919_v53, %s1687_s10 }
 0x130   : > { %v494_v8 = vpop.permute.xlu0 %493  ;;  %v554_v9 = vpop.permute.xlu2 %553 }
 0x131   : > { %535 = vst.msk [vmem:[%s1811_s17 + $0x92] sm:$0x1] %vm464_vm2, %v494_v8  ;;  %v484_v10 = vpop.permute.xlu1 %483 }
 0x132   : > { %597 = vst.msk [vmem:[%s1811_s17 + $0x63] sm:$0x1] %vm464_vm2, %v554_v9 }
 0x133   : > { %530 = vst.msk [vmem:[%s1811_s17 + $0x1a] sm:$0x1] %vm464_vm2, %v484_v10 }
 0x136   : > { %635 = vrot.lane.b32.xlu0 %v1892_v45, %s1684_s7  ;;  %627 = vrot.lane.b32.xlu2 %v1894_v46, %s1684_s7 }
 0x137   : > { %575 = vrot.lane.b32.xlu1 %v1940_v58, %s1687_s10 }
 0x138   : > { %v550_v12 = vpop.permute.xlu0 %549  ;;  %v560_v14 = vpop.permute.xlu2 %559 }
 0x139   : > { %595 = vst.msk [vmem:[%s1811_s17 + $0x33] sm:$0x1] %vm464_vm2, %v550_v12  ;;  %v490_v15 = vpop.permute.xlu1 %489 }
 0x13a   : > { %600 = vst.msk [vmem:[%s1811_s17 + $0xab] sm:$0x1] %vm464_vm2, %v560_v14 }
 0x13b   : > { %533 = vst.msk [vmem:[%s1811_s17 + $0x62] sm:$0x1] %vm464_vm2, %v490_v15 }
 0x13e   : > { %673 = vrot.lane.b32.xlu0 %v1749_v16, %s1688_s27  ;;  %633 = vrot.lane.b32.xlu2 %v1919_v53, %s1684_s7 }
 0x13f   : > { %631 = vrot.lane.b32.xlu1 %v1924_v54, %s1684_s7 }
 0x140   : > { %v556_v18 = vpop.permute.xlu0 %555  ;;  %v616_v21 = vpop.permute.xlu2 %615 }
 0x141   : > { %598 = vst.msk [vmem:[%s1811_s17 + $0x7b] sm:$0x1] %vm464_vm2, %v556_v18  ;;  %v496_v22 = vpop.permute.xlu1 %495 }
 0x142   : > { %660 = vst.msk [vmem:[%s1811_s17 + $0x4c] sm:$0x1] %vm464_vm2, %v616_v21 }
 0x143   : > { %536 = vst.msk [vmem:[%s1811_s17 + $0xaa] sm:$0x1] %vm464_vm2, %v496_v22 }
 0x146   : > { %679 = vrot.lane.b32.xlu0 %v1769_v25, %s1688_s27  ;;  %639 = vrot.lane.b32.xlu2 %v1940_v58, %s1684_s7 }
 0x147   : > { %637 = vrot.lane.b32.xlu1 %v1942_v59, %s1684_s7 }
 0x148   : > { %v612_v28 = vpop.permute.xlu0 %611  ;;  %v622_v33 = vpop.permute.xlu2 %621 }
 0x149   : > { %658 = vst.msk [vmem:[%s1811_s17 + $0x1c] sm:$0x1] %vm464_vm2, %v612_v28  ;;  %v552_v36 = vpop.permute.xlu1 %551 }
 0x14a   : > { %663 = vst.msk [vmem:[%s1811_s17 + $0x94] sm:$0x1] %vm464_vm2, %v622_v33 }
 0x14b   : > { %596 = vst.msk [vmem:[%s1811_s17 + $0x4b] sm:$0x1] %vm464_vm2, %v552_v36 }
 0x14e   : > { %685 = vrot.lane.b32.xlu0 %v1779_v29, %s1688_s27  ;;  %677 = vrot.lane.b32.xlu2 %v1759_v20, %s1688_s27 }
 0x14f   : > { %675 = vrot.lane.b32.xlu1 %v1771_v26, %s1688_s27 }
 0x150   : > { %v618_v42 = vpop.permute.xlu0 %617  ;;  %v498_v43 = vpop.permute.xlu2 %497 }
 0x151   : > { %661 = vst.msk [vmem:[%s1811_s17 + $0x64] sm:$0x1] %vm464_vm2, %v618_v42  ;;  %v558_v48 = vpop.permute.xlu1 %557 }
 0x152   : > { %537 = vst.msk [vmem:[%s1811_s17 + $0xc2] sm:$0x1] %vm464_vm2, %v498_v43 }
 0x153   : > { %599 = vst.msk [vmem:[%s1811_s17 + $0x93] sm:$0x1] %vm464_vm2, %v558_v48 }
 0x156   : > { %691 = vrot.lane.b32.xlu0 %v1894_v46, %s1688_s27  ;;  %683 = vrot.lane.b32.xlu2 %v1781_v30, %s1688_s27 }
 0x157   : > { %681 = vrot.lane.b32.xlu1 %v1757_v19, %s1688_s27 }
 0x158   : > { %v624_v50 = vpop.permute.xlu0 %623  ;;  %v435_v55 = vpop.permute.xlu2 %434 }
 0x159   : > { %664 = vst.msk [vmem:[%s1811_s17 + $0xac] sm:$0x1] %vm464_vm2, %v624_v50  ;;  %v614_v56 = vpop.permute.xlu1 %613 }
 0x15a   : > { %474 = vst.msk [vmem:[%s1811_s17 + $0xd9] sm:$0x1] %vm464_vm2, %v435_v55 }
 0x15b   : > { %659 = vst.msk [vmem:[%s1811_s17 + $0x34] sm:$0x1] %vm464_vm2, %v614_v56 }
 0x15e   : > { %697 = vrot.lane.b32.xlu0 %v1919_v53, %s1688_s27  ;;  %689 = vrot.lane.b32.xlu2 %v1858_v37, %s1688_s27 }
 0x15f   : > { %687 = vrot.lane.b32.xlu1 %v1767_v24, %s1688_s27 }
 0x160   : > { %v562_v60 = vpop.permute.xlu0 %561  ;;  %v441_v61 = vpop.permute.xlu2 %440 }
 0x161   : > { %601 = vst.msk [vmem:[%s1811_s17 + $0xc3] sm:$0x1] %vm464_vm2, %v562_v60  ;;  %v620_v62 = vpop.permute.xlu1 %619 }
 0x162   : > { %477 = vst.msk [vmem:[%s1811_s17 + $0x121] sm:$0x1] %vm464_vm2, %v441_v61 }
 0x163   : > { %662 = vst.msk [vmem:[%s1811_s17 + $0x7c] sm:$0x1] %vm464_vm2, %v620_v62 }
 0x166   : > { %703 = vrot.lane.b32.xlu0 %v1940_v58, %s1688_s27  ;;  %695 = vrot.lane.b32.xlu2 %v1924_v54, %s1688_s27 }
 0x167   : > { %693 = vrot.lane.b32.xlu1 %v1874_v40, %s1688_s27 }
 0x168   : > { %v437_v63 = vpop.permute.xlu0 %436  ;;  %v447_v0 = vpop.permute.xlu2 %446 }
 0x169   : > { %475 = vst.msk [vmem:[%s1811_s17 + $0xf1] sm:$0x1] %vm464_vm2, %v437_v63  ;;  %v433_v1 = vpop.permute.xlu1 %432 }
 0x16a   : > { %480 = vst.msk [vmem:[%s1811_s17 + $0x169] sm:$0x1] %vm464_vm2, %v447_v0 }
 0x16b   : > { %473 = vst.msk [vmem:[%s1811_s17 + $0xc1] sm:$0x1] %vm464_vm2, %v433_v1 }
 0x16e   : > { %741 = vrot.lane.b32.xlu0 %v1759_v20, %s1689_s11  ;;  %701 = vrot.lane.b32.xlu2 %v1942_v59, %s1688_s27 }
 0x16f   : > { %699 = vrot.lane.b32.xlu1 %v1892_v45, %s1688_s27 }
 0x170   : > { %v443_v2 = vpop.permute.xlu0 %442  ;;  %v504_v3 = vpop.permute.xlu2 %503 }
 0x171   : > { %478 = vst.msk [vmem:[%s1811_s17 + $0x139] sm:$0x1] %vm464_vm2, %v443_v2  ;;  %v626_v4 = vpop.permute.xlu1 %625 }
 0x172   : > { %540 = vst.msk [vmem:[%s1811_s17 + $0x10a] sm:$0x1] %vm464_vm2, %v504_v3 }
 0x173   : > { %665 = vst.msk [vmem:[%s1811_s17 + $0xc4] sm:$0x1] %vm464_vm2, %v626_v4 }
 0x176   : > { %747 = vrot.lane.b32.xlu0 %v1781_v30, %s1689_s11  ;;  %739 = vrot.lane.b32.xlu2 %v1771_v26, %s1689_s11 }
 0x177   : > { %737 = vrot.lane.b32.xlu1 %v1749_v16, %s1689_s11 }
 0x178   : > { %v500_v5 = vpop.permute.xlu0 %499  ;;  %v510_v6 = vpop.permute.xlu2 %509 }
 0x179   : > { %538 = vst.msk [vmem:[%s1811_s17 + $0xda] sm:$0x1] %vm464_vm2, %v500_v5  ;;  %v439_v7 = vpop.permute.xlu1 %438 }
 0x17a   : > { %543 = vst.msk [vmem:[%s1811_s17 + $0x152] sm:$0x1] %vm464_vm2, %v510_v6 }
 0x17b   : > { %476 = vst.msk [vmem:[%s1811_s17 + $0x109] sm:$0x1] %vm464_vm2, %v439_v7 }
 0x17e   : > { %753 = vrot.lane.b32.xlu0 %v1858_v37, %s1689_s11  ;;  %745 = vrot.lane.b32.xlu2 %v1757_v19, %s1689_s11 }
 0x17f   : > { %743 = vrot.lane.b32.xlu1 %v1769_v25, %s1689_s11 }
 0x180   : > { %v506_v8 = vpop.permute.xlu0 %505  ;;  %v566_v9 = vpop.permute.xlu2 %565 }
 0x181   : > { %541 = vst.msk [vmem:[%s1811_s17 + $0x122] sm:$0x1] %vm464_vm2, %v506_v8  ;;  %v445_v10 = vpop.permute.xlu1 %444 }
 0x182   : > { %603 = vst.msk [vmem:[%s1811_s17 + $0xf3] sm:$0x1] %vm464_vm2, %v566_v9 }
 0x183   : > { %479 = vst.msk [vmem:[%s1811_s17 + $0x151] sm:$0x1] %vm464_vm2, %v445_v10 }
 0x186   : > { %759 = vrot.lane.b32.xlu0 %v1924_v54, %s1689_s11  ;;  %751 = vrot.lane.b32.xlu2 %v1767_v24, %s1689_s11 }
 0x187   : > { %749 = vrot.lane.b32.xlu1 %v1779_v29, %s1689_s11 }
 0x188   : > { %v512_v12 = vpop.permute.xlu0 %511  ;;  %v572_v14 = vpop.permute.xlu2 %571 }
 0x189   : > { %544 = vst.msk [vmem:[%s1811_s17 + $0x16a] sm:$0x1] %vm464_vm2, %v512_v12  ;;  %v502_v15 = vpop.permute.xlu1 %501 }
 0x18a   : > { %606 = vst.msk [vmem:[%s1811_s17 + $0x13b] sm:$0x1] %vm464_vm2, %v572_v14 }
 0x18b   : > { %539 = vst.msk [vmem:[%s1811_s17 + $0xf2] sm:$0x1] %vm464_vm2, %v502_v15 }
 0x18e   : > { %765 = vrot.lane.b32.xlu0 %v1942_v59, %s1689_s11  ;;  %757 = vrot.lane.b32.xlu2 %v1874_v40, %s1689_s11 }
 0x18f   : > { %755 = vrot.lane.b32.xlu1 %v1894_v46, %s1689_s11 }
 0x190   : > { %v568_v18 = vpop.permute.xlu0 %567  ;;  %v628_v21 = vpop.permute.xlu2 %627 }
 0x191   : > { %604 = vst.msk [vmem:[%s1811_s17 + $0x10b] sm:$0x1] %vm464_vm2, %v568_v18  ;;  %v508_v22 = vpop.permute.xlu1 %507 }
 0x192   : > { %666 = vst.msk [vmem:[%s1811_s17 + $0xdc] sm:$0x1] %vm464_vm2, %v628_v21  ;;  %v381_v21 = vpop.f32.mrf.mxu3 }
 0x193   : > { %542 = vst.msk [vmem:[%s1811_s17 + $0x13a] sm:$0x1] %vm464_vm2, %v508_v22  ;;  %v2372_v22 = vadd.f32 %v381_v21, %v1845_v34 }
 0x196   : > { %803 = vrot.lane.b32.xlu0 %v1771_v26, %s1690_s12  ;;  %763 = vrot.lane.b32.xlu2 %v1892_v45, %s1689_s11 }
 0x197   : > { %761 = vrot.lane.b32.xlu1 %v1919_v53, %s1689_s11 }
 0x198   : > { %v574_v28 = vpop.permute.xlu0 %573  ;;  %v634_v33 = vpop.permute.xlu2 %633 }
 0x199   : > { %607 = vst.msk [vmem:[%s1811_s17 + $0x153] sm:$0x1] %vm464_vm2, %v574_v28  ;;  %v564_v36 = vpop.permute.xlu1 %563 }
 0x19a   : > { %669 = vst.msk [vmem:[%s1811_s17 + $0x124] sm:$0x1] %vm464_vm2, %v634_v33 }
 0x19b   : > { %602 = vst.msk [vmem:[%s1811_s17 + $0xdb] sm:$0x1] %vm464_vm2, %v564_v36 }
 0x19e   : > { %809 = vrot.lane.b32.xlu0 %v1757_v19, %s1690_s12  ;;  %801 = vrot.lane.b32.xlu2 %v1749_v16, %s1690_s12 }
 0x19f   : > { %767 = vrot.lane.b32.xlu1 %v1940_v58, %s1689_s11 }
 0x1a0   : > { %v630_v42 = vpop.permute.xlu0 %629  ;;  %v640_v43 = vpop.permute.xlu2 %639 }
 0x1a1   : > { %667 = vst.msk [vmem:[%s1811_s17 + $0xf4] sm:$0x1] %vm464_vm2, %v630_v42  ;;  %v570_v48 = vpop.permute.xlu1 %569 }
 0x1a2   : > { %672 = vst.msk [vmem:[%s1811_s17 + $0x16c] sm:$0x1] %vm464_vm2, %v640_v43 }
 0x1a3   : > { %605 = vst.msk [vmem:[%s1811_s17 + $0x123] sm:$0x1] %vm464_vm2, %v570_v48  ;;  %v2381_v48 = vperm.slane %v2372_v22, 0 }
 0x1a6   : > { %815 = vrot.lane.b32.xlu0 %v1767_v24, %s1690_s12  ;;  %807 = vrot.lane.b32.xlu2 %v1769_v25, %s1690_s12 }
 0x1a7   : > { %805 = vrot.lane.b32.xlu1 %v1759_v20, %s1690_s12 }
 0x1a8   : > { %v636_v50 = vpop.permute.xlu0 %635  ;;  %v678_v55 = vpop.permute.xlu2 %677 }
 0x1a9   : > { %670 = vst.msk [vmem:[%s1811_s17 + $0x13c] sm:$0x1] %vm464_vm2, %v636_v50  ;;  %v576_v56 = vpop.permute.xlu1 %575 }
 0x1aa   : > { %723 = vst.msk [vmem:[%s1811_s17 + $0x35] sm:$0x1] %vm464_vm2, %v678_v55 }
 0x1ab   : > { %608 = vst.msk [vmem:[%s1811_s17 + $0x16b] sm:$0x1] %vm464_vm2, %v576_v56 }
 0x1ae   : > { %821 = vrot.lane.b32.xlu0 %v1874_v40, %s1690_s12  ;;  %813 = vrot.lane.b32.xlu2 %v1779_v29, %s1690_s12 }
 0x1af   : > { %811 = vrot.lane.b32.xlu1 %v1781_v30, %s1690_s12 }
 0x1b0   : > { %v674_v60 = vpop.permute.xlu0 %673  ;;  %v684_v61 = vpop.permute.xlu2 %683 }
 0x1b1   : > { %721 = vst.msk [vmem:[%s1811_s17 + $0x5] sm:$0x1] %vm464_vm2, %v674_v60  ;;  %v632_v62 = vpop.permute.xlu1 %631  ;;  %v940_v60 = vrot.slane %v2372_v22, 3 }
 0x1b2   : > { %726 = vst.msk [vmem:[%s1811_s17 + $0x7d] sm:$0x1] %vm464_vm2, %v684_v61 }
 0x1b3   : > { %668 = vst.msk [vmem:[%s1811_s17 + $0x10c] sm:$0x1] %vm464_vm2, %v632_v62 }
 0x1b6   : > { %827 = vrot.lane.b32.xlu0 %v1892_v45, %s1690_s12  ;;  %819 = vrot.lane.b32.xlu2 %v1894_v46, %s1690_s12 }
 0x1b7   : > { %817 = vrot.lane.b32.xlu1 %v1858_v37, %s1690_s12 }
 0x1b8   : > { %v680_v63 = vpop.permute.xlu0 %679  ;;  %v690_v0 = vpop.permute.xlu2 %689 }
 0x1b9   : > { %724 = vst.msk [vmem:[%s1811_s17 + $0x4d] sm:$0x1] %vm464_vm2, %v680_v63  ;;  %v638_v1 = vpop.permute.xlu1 %637 }
 0x1ba   : > { %729 = vst.msk [vmem:[%s1811_s17 + $0xc5] sm:$0x1] %vm464_vm2, %v690_v0  ;;  %v2400_v0 = vperm.slane %v940_v60, 0 }
 0x1bb   : > { %671 = vst.msk [vmem:[%s1811_s17 + $0x154] sm:$0x1] %vm464_vm2, %v638_v1 }
 0x1be   : > { %865 = vrot.lane.b32.xlu0 %v1749_v16, %s1691_s13  ;;  %825 = vrot.lane.b32.xlu2 %v1919_v53, %s1690_s12 }
 0x1bf   : > { %823 = vrot.lane.b32.xlu1 %v1924_v54, %s1690_s12 }
 0x1c0   : > { %v686_v2 = vpop.permute.xlu0 %685  ;;  %v696_v3 = vpop.permute.xlu2 %695 }
 0x1c1   : > { %727 = vst.msk [vmem:[%s1811_s17 + $0x95] sm:$0x1] %vm464_vm2, %v686_v2  ;;  %v676_v4 = vpop.permute.xlu1 %675 }
 0x1c2   : > { %732 = vst.msk [vmem:[%s1811_s17 + $0x10d] sm:$0x1] %vm464_vm2, %v696_v3 }
 0x1c3   : > { %722 = vst.msk [vmem:[%s1811_s17 + $0x1d] sm:$0x1] %vm464_vm2, %v676_v4 }
 0x1c6   : > { %871 = vrot.lane.b32.xlu0 %v1769_v25, %s1691_s13  ;;  %831 = vrot.lane.b32.xlu2 %v1940_v58, %s1690_s12 }
 0x1c7   : > { %829 = vrot.lane.b32.xlu1 %v1942_v59, %s1690_s12 }
 0x1c8   : > { %v692_v16 = vpop.permute.xlu0 %691  ;;  %v702_v5 = vpop.permute.xlu2 %701 }
 0x1c9   : > { %730 = vst.msk [vmem:[%s1811_s17 + $0xdd] sm:$0x1] %vm464_vm2, %v692_v16  ;;  %v682_v6 = vpop.permute.xlu1 %681  ;;  %v943_v16 = vrot.slane %v2372_v22, 6 }
 0x1ca   : > { %735 = vst.msk [vmem:[%s1811_s17 + $0x155] sm:$0x1] %vm464_vm2, %v702_v5  ;;  %v939_v5 = vrot.slane %v2372_v22, 2 }
 0x1cb   : > { %725 = vst.msk [vmem:[%s1811_s17 + $0x65] sm:$0x1] %vm464_vm2, %v682_v6 }
 0x1ce   : > { %877 = vrot.lane.b32.xlu0 %v1779_v29, %s1691_s13  ;;  %869 = vrot.lane.b32.xlu2 %v1759_v20, %s1691_s13 }
 0x1cf   : > { %867 = vrot.lane.b32.xlu1 %v1771_v26, %s1691_s13 }
 0x1d0   : > { %v698_v25 = vpop.permute.xlu0 %697  ;;  %v740_v7 = vpop.permute.xlu2 %739 }
 0x1d1   : > { %733 = vst.msk [vmem:[%s1811_s17 + $0x125] sm:$0x1] %vm464_vm2, %v698_v25  ;;  %v688_v8 = vpop.permute.xlu1 %687  ;;  %v938_v25 = vrot.slane %v2372_v22, 1 }
 0x1d2   : > { %786 = vst.msk [vmem:[%s1811_s17 + $0x1e] sm:$0x1] %vm464_vm2, %v740_v7  ;;  %v2421_v7 = vperm.slane %v943_v16, 0 }
 0x1d3   : > { %728 = vst.msk [vmem:[%s1811_s17 + $0xad] sm:$0x1] %vm464_vm2, %v688_v8  ;;  %v2423_v8 = vperm.slane %v939_v5, 0 }
 0x1d6   : > { %883 = vrot.lane.b32.xlu0 %v1894_v46, %s1691_s13  ;;  %875 = vrot.lane.b32.xlu2 %v1781_v30, %s1691_s13  ;;  %v378_v46 = vpop.f32.mrf.mxu1 }
 0x1d7   : > { %873 = vrot.lane.b32.xlu1 %v1757_v19, %s1691_s13 }
 0x1d8   : > { %v704_v20 = vpop.permute.xlu0 %703  ;;  %v746_v26 = vpop.permute.xlu2 %745 }
 0x1d9   : > { %736 = vst.msk [vmem:[%s1811_s17 + $0x16d] sm:$0x1] %vm464_vm2, %v704_v20  ;;  %v694_v29 = vpop.permute.xlu1 %693  ;;  %v2425_v20 = vperm.slane %v938_v25, 0 }
 0x1da   : > { %789 = vst.msk [vmem:[%s1811_s17 + $0x66] sm:$0x1] %vm464_vm2, %v746_v26 }
 0x1db   : > { %731 = vst.msk [vmem:[%s1811_s17 + $0xf5] sm:$0x1] %vm464_vm2, %v694_v29 }
 0x1de   : > { %889 = vrot.lane.b32.xlu0 %v1919_v53, %s1691_s13  ;;  %881 = vrot.lane.b32.xlu2 %v1858_v37, %s1691_s13  ;;  %v379_v53 = vadd.f32 %v378_v46, %v1746_v13  ;;  %v941_v46 = vrot.slane %v2372_v22, 4 }
 0x1df   : > { %879 = vrot.lane.b32.xlu1 %v1767_v24, %s1691_s13 }
 0x1e0   : > { %v742_v19 = vpop.permute.xlu0 %741  ;;  %v752_v30 = vpop.permute.xlu2 %751  ;;  %v932_v10 = vrot.slane %v379_v53, 2  ;;  %v931_v14 = vrot.slane %v379_v53, 1  ;;  %v934_v36 = vrot.slane %v379_v53, 4  ;;  %v933_v43 = vrot.slane %v379_v53, 3 }
 0x1e1   : > { %787 = vst.msk [vmem:[%s1811_s17 + $0x36] sm:$0x1] %vm464_vm2, %v742_v19  ;;  %v700_v9 = vpop.permute.xlu1 %699  ;;  %v937_v61 = vrot.slane %v379_v53, 7  ;;  %v936_v63 = vrot.slane %v379_v53, 6  ;;  %v942_v19 = vrot.slane %v2372_v22, 5 }
 0x1e2   : > { %792 = vst.msk [vmem:[%s1811_s17 + $0xae] sm:$0x1] %vm464_vm2, %v752_v30  ;;  %v2345_v13 = vperm.slane %v932_v10, 0  ;;  %v2383_v50 = vperm.slane %v934_v36, 0  ;;  %v2385_v34 = vperm.slane %v933_v43, 0 }
 0x1e3   : > { %734 = vst.msk [vmem:[%s1811_s17 + $0x13d] sm:$0x1] %vm464_vm2, %v700_v9  ;;  %v2402_v1 = vperm.slane %v937_v61, 0  ;;  %v2404_v2 = vperm.slane %v936_v63, 0  ;;  %v2441_v9 = vperm.slane %v942_v19, 0 }
 0x1e6   : > { %895 = vrot.lane.b32.xlu0 %v1940_v58, %s1691_s13  ;;  %887 = vrot.lane.b32.xlu2 %v1924_v54, %s1691_s13  ;;  %v935_v58 = vrot.slane %v379_v53, 5 }
 0x1e7   : > { %885 = vrot.lane.b32.xlu1 %v1874_v40, %s1691_s13 }
 0x1e8   : > { %v748_v24 = vpop.permute.xlu0 %747  ;;  %v758_v37 = vpop.permute.xlu2 %757  ;;  %v2359_v18 = vperm.slane %v935_v58, 0 }
 0x1e9   : > { %790 = vst.msk [vmem:[%s1811_s17 + $0x7e] sm:$0x1] %vm464_vm2, %v748_v24  ;;  %v738_v12 = vpop.permute.xlu1 %737 }
 0x1ea   : > { %795 = vst.msk [vmem:[%s1811_s17 + $0xf6] sm:$0x1] %vm464_vm2, %v758_v37 }
 0x1eb   : > { %785 = vst.msk [vmem:[%s1811_s17 + $0x6] sm:$0x1] %vm464_vm2, %v738_v12  ;;  %v944_v12 = vrot.slane %v2372_v22, 7 }
 0x1ee   : > { %965 = vrot.lane.b32.xlu0 %v2345_v13, %s1686_s9  ;;  %893 = vrot.lane.b32.xlu2 %v1942_v59, %s1691_s13  ;;  %v2361_v59 = vperm.slane %v931_v14, 0 }
 0x1ef   : > { %891 = vrot.lane.b32.xlu1 %v1892_v45, %s1691_s13  ;;  %v2363_v45 = vperm.slane %v379_v53, 0  ;;  %v2443_v53 = vperm.slane %v941_v46, 0 }
 0x1f0   : > { %v754_v40 = vpop.permute.xlu0 %753  ;;  %v764_v54 = vpop.permute.xlu2 %763 }
 0x1f1   : > { %793 = vst.msk [vmem:[%s1811_s17 + $0xc6] sm:$0x1] %vm464_vm2, %v754_v40  ;;  %v744_v15 = vpop.permute.xlu1 %743  ;;  %v2458_v40 = vperm.slane %v944_v12, 0 }
 0x1f2   : > { %798 = vst.msk [vmem:[%s1811_s17 + $0x13e] sm:$0x1] %vm464_vm2, %v764_v54 }
 0x1f3   : > { %788 = vst.msk [vmem:[%s1811_s17 + $0x4e] sm:$0x1] %vm464_vm2, %v744_v15 }
 0x1f6   : > { %971 = vrot.lane.b32.xlu0 %v2359_v18, %s1686_s9  ;;  %963 = vrot.lane.b32.xlu2 %v2361_v59, %s1686_s9 }
 0x1f7   : > { %961 = vrot.lane.b32.xlu1 %v2363_v45, %s1686_s9 }
 0x1f8   : > { %v760_v28 = vpop.permute.xlu0 %759  ;;  %v802_v33 = vpop.permute.xlu2 %801 }
 0x1f9   : > { %796 = vst.msk [vmem:[%s1811_s17 + $0x10e] sm:$0x1] %vm464_vm2, %v760_v28  ;;  %v750_v42 = vpop.permute.xlu1 %749 }
 0x1fa   : > { %849 = vst.msk [vmem:[%s1811_s17 + $0x7] sm:$0x1] %vm464_vm2, %v802_v33 }
 0x1fb   : > { %791 = vst.msk [vmem:[%s1811_s17 + $0x96] sm:$0x1] %vm464_vm2, %v750_v42 }
 0x1fe   : > { %977 = vrot.lane.b32.xlu0 %v2381_v48, %s1686_s9  ;;  %969 = vrot.lane.b32.xlu2 %v2383_v50, %s1686_s9 }
 0x1ff   : > { %967 = vrot.lane.b32.xlu1 %v2385_v34, %s1686_s9 }
 0x200   : > { %v766_v55 = vpop.permute.xlu0 %765  ;;  %v808_v56 = vpop.permute.xlu2 %807 }
 0x201   : > { %799 = vst.msk [vmem:[%s1811_s17 + $0x156] sm:$0x1] %vm464_vm2, %v766_v55  ;;  %v756_v62 = vpop.permute.xlu1 %755 }
 0x202   : > { %852 = vst.msk [vmem:[%s1811_s17 + $0x4f] sm:$0x1] %vm464_vm2, %v808_v56 }
 0x203   : > { %794 = vst.msk [vmem:[%s1811_s17 + $0xde] sm:$0x1] %vm464_vm2, %v756_v62 }
 0x206   : > { %983 = vrot.lane.b32.xlu0 %v2400_v0, %s1686_s9  ;;  %975 = vrot.lane.b32.xlu2 %v2402_v1, %s1686_s9 }
 0x207   : > { %973 = vrot.lane.b32.xlu1 %v2404_v2, %s1686_s9 }
 0x208   : > { %v804_v3 = vpop.permute.xlu0 %803  ;;  %v814_v4 = vpop.permute.xlu2 %813 }
 0x209   : > { %850 = vst.msk [vmem:[%s1811_s17 + $0x1f] sm:$0x1] %vm464_vm2, %v804_v3  ;;  %v762_v6 = vpop.permute.xlu1 %761 }
 0x20a   : > { %855 = vst.msk [vmem:[%s1811_s17 + $0x97] sm:$0x1] %vm464_vm2, %v814_v4 }
 0x20b   : > { %797 = vst.msk [vmem:[%s1811_s17 + $0x126] sm:$0x1] %vm464_vm2, %v762_v6 }
 0x20e   : > { %989 = vrot.lane.b32.xlu0 %v2421_v7, %s1686_s9  ;;  %981 = vrot.lane.b32.xlu2 %v2423_v8, %s1686_s9 }
 0x20f   : > { %979 = vrot.lane.b32.xlu1 %v2425_v20, %s1686_s9 }
 0x210   : > { %v810_v26 = vpop.permute.xlu0 %809  ;;  %v820_v29 = vpop.permute.xlu2 %819 }
 0x211   : > { %853 = vst.msk [vmem:[%s1811_s17 + $0x67] sm:$0x1] %vm464_vm2, %v810_v26  ;;  %v768_v30 = vpop.permute.xlu1 %767 }
 0x212   : > { %858 = vst.msk [vmem:[%s1811_s17 + $0xdf] sm:$0x1] %vm464_vm2, %v820_v29 }
 0x213   : > { %800 = vst.msk [vmem:[%s1811_s17 + $0x16e] sm:$0x1] %vm464_vm2, %v768_v30 }
 0x216   : > { %1027 = vrot.lane.b32.xlu0 %v2361_v59, %s1685_s8  ;;  %987 = vrot.lane.b32.xlu2 %v2441_v9, %s1686_s9 }
 0x217   : > { %985 = vrot.lane.b32.xlu1 %v2443_v53, %s1686_s9 }
 0x218   : > { %v816_v24 = vpop.permute.xlu0 %815  ;;  %v826_v37 = vpop.permute.xlu2 %825 }
 0x219   : > { %856 = vst.msk [vmem:[%s1811_s17 + $0xaf] sm:$0x1] %vm464_vm2, %v816_v24  ;;  %v806_v10 = vpop.permute.xlu1 %805 }
 0x21a   : > { %861 = vst.msk [vmem:[%s1811_s17 + $0x127] sm:$0x1] %vm464_vm2, %v826_v37 }
 0x21b   : > { %851 = vst.msk [vmem:[%s1811_s17 + $0x37] sm:$0x1] %vm464_vm2, %v806_v10 }
 0x21e   : > { %1033 = vrot.lane.b32.xlu0 %v2383_v50, %s1685_s8  ;;  %1025 = vrot.lane.b32.xlu2 %v2363_v45, %s1685_s8 }
 0x21f   : > { %991 = vrot.lane.b32.xlu1 %v2458_v40, %s1686_s9 }
 0x220   : > { %v822_v54 = vpop.permute.xlu0 %821  ;;  %v832_v58 = vpop.permute.xlu2 %831 }
 0x221   : > { %859 = vst.msk [vmem:[%s1811_s17 + $0xf7] sm:$0x1] %vm464_vm2, %v822_v54  ;;  %v812_v14 = vpop.permute.xlu1 %811 }
 0x222   : > { %864 = vst.msk [vmem:[%s1811_s17 + $0x16f] sm:$0x1] %vm464_vm2, %v832_v58 }
 0x223   : > { %854 = vst.msk [vmem:[%s1811_s17 + $0x7f] sm:$0x1] %vm464_vm2, %v812_v14 }
 0x226   : > { %1039 = vrot.lane.b32.xlu0 %v2402_v1, %s1685_s8  ;;  %1031 = vrot.lane.b32.xlu2 %v2385_v34, %s1685_s8 }
 0x227   : > { %1029 = vrot.lane.b32.xlu1 %v2345_v13, %s1685_s8 }
 0x228   : > { %v828_v15 = vpop.permute.xlu0 %827  ;;  %v870_v21 = vpop.permute.xlu2 %869 }
 0x229   : > { %862 = vst.msk [vmem:[%s1811_s17 + $0x13f] sm:$0x1] %vm464_vm2, %v828_v15  ;;  %v818_v22 = vpop.permute.xlu1 %817 }
 0x22a   : > { %915 = vst.msk [vmem:[%s1811_s17 + $0x38] sm:$0x1] %vm464_vm2, %v870_v21 }
 0x22b   : > { %857 = vst.msk [vmem:[%s1811_s17 + $0xc7] sm:$0x1] %vm464_vm2, %v818_v22 }
 0x22e   : > { %1045 = vrot.lane.b32.xlu0 %v2423_v8, %s1685_s8  ;;  %1037 = vrot.lane.b32.xlu2 %v2404_v2, %s1685_s8 }
 0x22f   : > { %1035 = vrot.lane.b32.xlu1 %v2359_v18, %s1685_s8 }
 0x230   : > { %v866_v28 = vpop.permute.xlu0 %865  ;;  %v876_v33 = vpop.permute.xlu2 %875 }
 0x231   : > { %913 = vst.msk [vmem:[%s1811_s17 + $0x8] sm:$0x1] %vm464_vm2, %v866_v28  ;;  %v824_v36 = vpop.permute.xlu1 %823 }
 0x232   : > { %918 = vst.msk [vmem:[%s1811_s17 + $0x80] sm:$0x1] %vm464_vm2, %v876_v33 }
 0x233   : > { %860 = vst.msk [vmem:[%s1811_s17 + $0x10f] sm:$0x1] %vm464_vm2, %v824_v36 }
 0x236   : > { %1051 = vrot.lane.b32.xlu0 %v2441_v9, %s1685_s8  ;;  %1043 = vrot.lane.b32.xlu2 %v2425_v20, %s1685_s8 }
 0x237   : > { %1041 = vrot.lane.b32.xlu1 %v2381_v48, %s1685_s8 }
 0x238   : > { %v872_v42 = vpop.permute.xlu0 %871  ;;  %v882_v43 = vpop.permute.xlu2 %881 }
 0x239   : > { %916 = vst.msk [vmem:[%s1811_s17 + $0x50] sm:$0x1] %vm464_vm2, %v872_v42  ;;  %v830_v55 = vpop.permute.xlu1 %829 }
 0x23a   : > { %921 = vst.msk [vmem:[%s1811_s17 + $0xc8] sm:$0x1] %vm464_vm2, %v882_v43 }
 0x23b   : > { %863 = vst.msk [vmem:[%s1811_s17 + $0x157] sm:$0x1] %vm464_vm2, %v830_v55 }
 0x23e   : > { %1089 = vrot.lane.b32.xlu0 %v2363_v45, %s1687_s10  ;;  %1049 = vrot.lane.b32.xlu2 %v2443_v53, %s1685_s8 }
 0x23f   : > { %1047 = vrot.lane.b32.xlu1 %v2400_v0, %s1685_s8 }
 0x240   : > { %v878_v56 = vpop.permute.xlu0 %877  ;;  %v888_v60 = vpop.permute.xlu2 %887 }
 0x241   : > { %919 = vst.msk [vmem:[%s1811_s17 + $0x98] sm:$0x1] %vm464_vm2, %v878_v56  ;;  %v868_v61 = vpop.permute.xlu1 %867 }
 0x242   : > { %924 = vst.msk [vmem:[%s1811_s17 + $0x110] sm:$0x1] %vm464_vm2, %v888_v60 }
 0x243   : > { %914 = vst.msk [vmem:[%s1811_s17 + $0x20] sm:$0x1] %vm464_vm2, %v868_v61 }
 0x246   : > { %1095 = vrot.lane.b32.xlu0 %v2385_v34, %s1687_s10  ;;  %1055 = vrot.lane.b32.xlu2 %v2458_v40, %s1685_s8 }
 0x247   : > { %1053 = vrot.lane.b32.xlu1 %v2421_v7, %s1685_s8 }
 0x248   : > { %v884_v62 = vpop.permute.xlu0 %883  ;;  %v894_v63 = vpop.permute.xlu2 %893 }
 0x249   : > { %922 = vst.msk [vmem:[%s1811_s17 + $0xe0] sm:$0x1] %vm464_vm2, %v884_v62  ;;  %v874_v3 = vpop.permute.xlu1 %873 }
 0x24a   : > { %927 = vst.msk [vmem:[%s1811_s17 + $0x158] sm:$0x1] %vm464_vm2, %v894_v63 }
 0x24b   : > { %917 = vst.msk [vmem:[%s1811_s17 + $0x68] sm:$0x1] %vm464_vm2, %v874_v3 }
 0x24e   : > { %1101 = vrot.lane.b32.xlu0 %v2404_v2, %s1687_s10  ;;  %1093 = vrot.lane.b32.xlu2 %v2345_v13, %s1687_s10 }
 0x24f   : > { %1091 = vrot.lane.b32.xlu1 %v2361_v59, %s1687_s10 }
 0x250   : > { %v890_v4 = vpop.permute.xlu0 %889  ;;  %v964_v16 = vpop.permute.xlu2 %963 }
 0x251   : > { %925 = vst.msk [vmem:[%s1811_s17 + $0x128] sm:$0x1] %vm464_vm2, %v890_v4  ;;  %v880_v5 = vpop.permute.xlu1 %879 }
 0x252   : > { %1010 = vst.msk [vmem:[%s1811_s17 + $0x21] sm:$0x1] %vm464_vm2, %v964_v16 }
 0x253   : > { %920 = vst.msk [vmem:[%s1811_s17 + $0xb0] sm:$0x1] %vm464_vm2, %v880_v5 }
 0x256   : > { %1107 = vrot.lane.b32.xlu0 %v2425_v20, %s1687_s10  ;;  %1099 = vrot.lane.b32.xlu2 %v2359_v18, %s1687_s10 }
 0x257   : > { %1097 = vrot.lane.b32.xlu1 %v2383_v50, %s1687_s10 }
 0x258   : > { %v896_v6 = vpop.permute.xlu0 %895  ;;  %v970_v25 = vpop.permute.xlu2 %969 }
 0x259   : > { %928 = vst.msk [vmem:[%s1811_s17 + $0x170] sm:$0x1] %vm464_vm2, %v896_v6  ;;  %v886_v26 = vpop.permute.xlu1 %885 }
 0x25a   : > { %1013 = vst.msk [vmem:[%s1811_s17 + $0x69] sm:$0x1] %vm464_vm2, %v970_v25 }
 0x25b   : > { %923 = vst.msk [vmem:[%s1811_s17 + $0xf8] sm:$0x1] %vm464_vm2, %v886_v26 }
 0x25e   : > { %1113 = vrot.lane.b32.xlu0 %v2443_v53, %s1687_s10  ;;  %1105 = vrot.lane.b32.xlu2 %v2381_v48, %s1687_s10 }
 0x25f   : > { %1103 = vrot.lane.b32.xlu1 %v2402_v1, %s1687_s10 }
 0x260   : > { %v966_v29 = vpop.permute.xlu0 %965  ;;  %v976_v19 = vpop.permute.xlu2 %975 }
 0x261   : > { %1011 = vst.msk [vmem:[%s1811_s17 + $0x39] sm:$0x1] %vm464_vm2, %v966_v29  ;;  %v892_v30 = vpop.permute.xlu1 %891 }
 0x262   : > { %1016 = vst.msk [vmem:[%s1811_s17 + $0xb1] sm:$0x1] %vm464_vm2, %v976_v19 }
 0x263   : > { %926 = vst.msk [vmem:[%s1811_s17 + $0x140] sm:$0x1] %vm464_vm2, %v892_v30 }
 0x266   : > { %1119 = vrot.lane.b32.xlu0 %v2458_v40, %s1687_s10  ;;  %1111 = vrot.lane.b32.xlu2 %v2400_v0, %s1687_s10 }
 0x267   : > { %1109 = vrot.lane.b32.xlu1 %v2423_v8, %s1687_s10 }
 0x268   : > { %v972_v46 = vpop.permute.xlu0 %971  ;;  %v982_v24 = vpop.permute.xlu2 %981 }
 0x269   : > { %1014 = vst.msk [vmem:[%s1811_s17 + $0x81] sm:$0x1] %vm464_vm2, %v972_v46  ;;  %v962_v37 = vpop.permute.xlu1 %961 }
 0x26a   : > { %1019 = vst.msk [vmem:[%s1811_s17 + $0xf9] sm:$0x1] %vm464_vm2, %v982_v24 }
 0x26b   : > { %1009 = vst.msk [vmem:[%s1811_s17 + $0x9] sm:$0x1] %vm464_vm2, %v962_v37 }
 0x26e   : > { %1157 = vrot.lane.b32.xlu0 %v2345_v13, %s1684_s7  ;;  %1117 = vrot.lane.b32.xlu2 %v2421_v7, %s1687_s10 }
 0x26f   : > { %1115 = vrot.lane.b32.xlu1 %v2441_v9, %s1687_s10 }
 0x270   : > { %v978_v10 = vpop.permute.xlu0 %977  ;;  %v988_v12 = vpop.permute.xlu2 %987 }
 0x271   : > { %1017 = vst.msk [vmem:[%s1811_s17 + $0xc9] sm:$0x1] %vm464_vm2, %v978_v10  ;;  %v968_v54 = vpop.permute.xlu1 %967 }
 0x272   : > { %1022 = vst.msk [vmem:[%s1811_s17 + $0x141] sm:$0x1] %vm464_vm2, %v988_v12 }
 0x273   : > { %1012 = vst.msk [vmem:[%s1811_s17 + $0x51] sm:$0x1] %vm464_vm2, %v968_v54 }
 0x276   : > { %1163 = vrot.lane.b32.xlu0 %v2359_v18, %s1684_s7  ;;  %1155 = vrot.lane.b32.xlu2 %v2361_v59, %s1684_s7 }
 0x277   : > { %1153 = vrot.lane.b32.xlu1 %v2363_v45, %s1684_s7 }
 0x278   : > { %v984_v58 = vpop.permute.xlu0 %983  ;;  %v1026_v14 = vpop.permute.xlu2 %1025 }
 0x279   : > { %1020 = vst.msk [vmem:[%s1811_s17 + $0x111] sm:$0x1] %vm464_vm2, %v984_v58  ;;  %v974_v15 = vpop.permute.xlu1 %973 }
 0x27a   : > { %1073 = vst.msk [vmem:[%s1811_s17 + $0xa] sm:$0x1] %vm464_vm2, %v1026_v14 }
 0x27b   : > { %1015 = vst.msk [vmem:[%s1811_s17 + $0x99] sm:$0x1] %vm464_vm2, %v974_v15 }
 0x27e   : > { %1169 = vrot.lane.b32.xlu0 %v2381_v48, %s1684_s7  ;;  %1161 = vrot.lane.b32.xlu2 %v2383_v50, %s1684_s7 }
 0x27f   : > { %1159 = vrot.lane.b32.xlu1 %v2385_v34, %s1684_s7 }
 0x280   : > { %v990_v21 = vpop.permute.xlu0 %989  ;;  %v1032_v22 = vpop.permute.xlu2 %1031 }
 0x281   : > { %1023 = vst.msk [vmem:[%s1811_s17 + $0x159] sm:$0x1] %vm464_vm2, %v990_v21  ;;  %v980_v28 = vpop.permute.xlu1 %979 }
 0x282   : > { %1076 = vst.msk [vmem:[%s1811_s17 + $0x52] sm:$0x1] %vm464_vm2, %v1032_v22 }
 0x283   : > { %1018 = vst.msk [vmem:[%s1811_s17 + $0xe1] sm:$0x1] %vm464_vm2, %v980_v28 }
 0x286   : > { %1175 = vrot.lane.b32.xlu0 %v2400_v0, %s1684_s7  ;;  %1167 = vrot.lane.b32.xlu2 %v2402_v1, %s1684_s7 }
 0x287   : > { %1165 = vrot.lane.b32.xlu1 %v2404_v2, %s1684_s7 }
 0x288   : > { %v1028_v33 = vpop.permute.xlu0 %1027  ;;  %v1038_v36 = vpop.permute.xlu2 %1037 }
 0x289   : > { %1074 = vst.msk [vmem:[%s1811_s17 + $0x22] sm:$0x1] %vm464_vm2, %v1028_v33  ;;  %v986_v42 = vpop.permute.xlu1 %985 }
 0x28a   : > { %1079 = vst.msk [vmem:[%s1811_s17 + $0x9a] sm:$0x1] %vm464_vm2, %v1038_v36 }
 0x28b   : > { %1021 = vst.msk [vmem:[%s1811_s17 + $0x129] sm:$0x1] %vm464_vm2, %v986_v42 }
 0x28e   : > { %1181 = vrot.lane.b32.xlu0 %v2421_v7, %s1684_s7  ;;  %1173 = vrot.lane.b32.xlu2 %v2423_v8, %s1684_s7 }
 0x28f   : > { %1171 = vrot.lane.b32.xlu1 %v2425_v20, %s1684_s7 }
 0x290   : > { %v1034_v43 = vpop.permute.xlu0 %1033  ;;  %v1044_v55 = vpop.permute.xlu2 %1043 }
 0x291   : > { %1077 = vst.msk [vmem:[%s1811_s17 + $0x6a] sm:$0x1] %vm464_vm2, %v1034_v43  ;;  %v992_v56 = vpop.permute.xlu1 %991 }
 0x292   : > { %1082 = vst.msk [vmem:[%s1811_s17 + $0xe2] sm:$0x1] %vm464_vm2, %v1044_v55 }
 0x293   : > { %1024 = vst.msk [vmem:[%s1811_s17 + $0x171] sm:$0x1] %vm464_vm2, %v992_v56 }
 0x296   : > { %1219 = vrot.lane.b32.xlu0 %v2361_v59, %s1688_s27  ;;  %1179 = vrot.lane.b32.xlu2 %v2441_v9, %s1684_s7 }
 0x297   : > { %1177 = vrot.lane.b32.xlu1 %v2443_v53, %s1684_s7 }
 0x298   : > { %v1040_v60 = vpop.permute.xlu0 %1039  ;;  %v1050_v61 = vpop.permute.xlu2 %1049 }
 0x299   : > { %1080 = vst.msk [vmem:[%s1811_s17 + $0xb2] sm:$0x1] %vm464_vm2, %v1040_v60  ;;  %v1030_v62 = vpop.permute.xlu1 %1029 }
 0x29a   : > { %1085 = vst.msk [vmem:[%s1811_s17 + $0x12a] sm:$0x1] %vm464_vm2, %v1050_v61 }
 0x29b   : > { %1075 = vst.msk [vmem:[%s1811_s17 + $0x3a] sm:$0x1] %vm464_vm2, %v1030_v62 }
 0x29e   : > { %1225 = vrot.lane.b32.xlu0 %v2383_v50, %s1688_s27  ;;  %1217 = vrot.lane.b32.xlu2 %v2363_v45, %s1688_s27 }
 0x29f   : > { %1183 = vrot.lane.b32.xlu1 %v2458_v40, %s1684_s7 }
 0x2a0   : > { %v1046_v63 = vpop.permute.xlu0 %1045  ;;  %v1056_v3 = vpop.permute.xlu2 %1055 }
 0x2a1   : > { %1083 = vst.msk [vmem:[%s1811_s17 + $0xfa] sm:$0x1] %vm464_vm2, %v1046_v63  ;;  %v1036_v4 = vpop.permute.xlu1 %1035 }
 0x2a2   : > { %1088 = vst.msk [vmem:[%s1811_s17 + $0x172] sm:$0x1] %vm464_vm2, %v1056_v3 }
 0x2a3   : > { %1078 = vst.msk [vmem:[%s1811_s17 + $0x82] sm:$0x1] %vm464_vm2, %v1036_v4 }
 0x2a6   : > { %1231 = vrot.lane.b32.xlu0 %v2402_v1, %s1688_s27  ;;  %1223 = vrot.lane.b32.xlu2 %v2385_v34, %s1688_s27 }
 0x2a7   : > { %1221 = vrot.lane.b32.xlu1 %v2345_v13, %s1688_s27 }
 0x2a8   : > { %v1052_v16 = vpop.permute.xlu0 %1051  ;;  %v1094_v5 = vpop.permute.xlu2 %1093 }
 0x2a9   : > { %1086 = vst.msk [vmem:[%s1811_s17 + $0x142] sm:$0x1] %vm464_vm2, %v1052_v16  ;;  %v1042_v6 = vpop.permute.xlu1 %1041 }
 0x2aa   : > { %1139 = vst.msk [vmem:[%s1811_s17 + $0x3b] sm:$0x1] %vm464_vm2, %v1094_v5 }
 0x2ab   : > { %1081 = vst.msk [vmem:[%s1811_s17 + $0xca] sm:$0x1] %vm464_vm2, %v1042_v6 }
 0x2ae   : > { %1237 = vrot.lane.b32.xlu0 %v2423_v8, %s1688_s27  ;;  %1229 = vrot.lane.b32.xlu2 %v2404_v2, %s1688_s27 }
 0x2af   : > { %1227 = vrot.lane.b32.xlu1 %v2359_v18, %s1688_s27 }
 0x2b0   : > { %v1090_v25 = vpop.permute.xlu0 %1089  ;;  %v1100_v26 = vpop.permute.xlu2 %1099 }
 0x2b1   : > { %1137 = vst.msk [vmem:[%s1811_s17 + $0xb] sm:$0x1] %vm464_vm2, %v1090_v25  ;;  %v1048_v29 = vpop.permute.xlu1 %1047 }
 0x2b2   : > { %1142 = vst.msk [vmem:[%s1811_s17 + $0x83] sm:$0x1] %vm464_vm2, %v1100_v26 }
 0x2b3   : > { %1084 = vst.msk [vmem:[%s1811_s17 + $0x112] sm:$0x1] %vm464_vm2, %v1048_v29 }
 0x2b6   : > { %1243 = vrot.lane.b32.xlu0 %v2441_v9, %s1688_s27  ;;  %1235 = vrot.lane.b32.xlu2 %v2425_v20, %s1688_s27 }
 0x2b7   : > { %1233 = vrot.lane.b32.xlu1 %v2381_v48, %s1688_s27 }
 0x2b8   : > { %v1096_v19 = vpop.permute.xlu0 %1095  ;;  %v1106_v30 = vpop.permute.xlu2 %1105 }
 0x2b9   : > { %1140 = vst.msk [vmem:[%s1811_s17 + $0x53] sm:$0x1] %vm464_vm2, %v1096_v19  ;;  %v1054_v46 = vpop.permute.xlu1 %1053 }
 0x2ba   : > { %1145 = vst.msk [vmem:[%s1811_s17 + $0xcb] sm:$0x1] %vm464_vm2, %v1106_v30 }
 0x2bb   : > { %1087 = vst.msk [vmem:[%s1811_s17 + $0x15a] sm:$0x1] %vm464_vm2, %v1054_v46 }
 0x2be   : > { %1281 = vrot.lane.b32.xlu0 %v2363_v45, %s1689_s11  ;;  %1241 = vrot.lane.b32.xlu2 %v2443_v53, %s1688_s27 }
 0x2bf   : > { %1239 = vrot.lane.b32.xlu1 %v2400_v0, %s1688_s27 }
 0x2c0   : > { %v1102_v24 = vpop.permute.xlu0 %1101  ;;  %v1112_v37 = vpop.permute.xlu2 %1111 }
 0x2c1   : > { %1143 = vst.msk [vmem:[%s1811_s17 + $0x9b] sm:$0x1] %vm464_vm2, %v1102_v24  ;;  %v1092_v10 = vpop.permute.xlu1 %1091 }
 0x2c2   : > { %1148 = vst.msk [vmem:[%s1811_s17 + $0x113] sm:$0x1] %vm464_vm2, %v1112_v37 }
 0x2c3   : > { %1138 = vst.msk [vmem:[%s1811_s17 + $0x23] sm:$0x1] %vm464_vm2, %v1092_v10 }
 0x2c6   : > { %1287 = vrot.lane.b32.xlu0 %v2385_v34, %s1689_s11  ;;  %1247 = vrot.lane.b32.xlu2 %v2458_v40, %s1688_s27 }
 0x2c7   : > { %1245 = vrot.lane.b32.xlu1 %v2421_v7, %s1688_s27 }
 0x2c8   : > { %v1108_v12 = vpop.permute.xlu0 %1107  ;;  %v1118_v54 = vpop.permute.xlu2 %1117 }
 0x2c9   : > { %1146 = vst.msk [vmem:[%s1811_s17 + $0xe3] sm:$0x1] %vm464_vm2, %v1108_v12  ;;  %v1098_v58 = vpop.permute.xlu1 %1097 }
 0x2ca   : > { %1151 = vst.msk [vmem:[%s1811_s17 + $0x15b] sm:$0x1] %vm464_vm2, %v1118_v54 }
 0x2cb   : > { %1141 = vst.msk [vmem:[%s1811_s17 + $0x6b] sm:$0x1] %vm464_vm2, %v1098_v58 }
 0x2ce   : > { %1293 = vrot.lane.b32.xlu0 %v2404_v2, %s1689_s11  ;;  %1285 = vrot.lane.b32.xlu2 %v2345_v13, %s1689_s11 }
 0x2cf   : > { %1283 = vrot.lane.b32.xlu1 %v2361_v59, %s1689_s11 }
 0x2d0   : > { %v1114_v14 = vpop.permute.xlu0 %1113  ;;  %v1156_v15 = vpop.permute.xlu2 %1155 }
 0x2d1   : > { %1149 = vst.msk [vmem:[%s1811_s17 + $0x12b] sm:$0x1] %vm464_vm2, %v1114_v14  ;;  %v1104_v21 = vpop.permute.xlu1 %1103 }
 0x2d2   : > { %1202 = vst.msk [vmem:[%s1811_s17 + $0x24] sm:$0x1] %vm464_vm2, %v1156_v15 }
 0x2d3   : > { %1144 = vst.msk [vmem:[%s1811_s17 + $0xb3] sm:$0x1] %vm464_vm2, %v1104_v21 }
 0x2d6   : > { %1299 = vrot.lane.b32.xlu0 %v2425_v20, %s1689_s11  ;;  %1291 = vrot.lane.b32.xlu2 %v2359_v18, %s1689_s11 }
 0x2d7   : > { %1289 = vrot.lane.b32.xlu1 %v2383_v50, %s1689_s11 }
 0x2d8   : > { %v1120_v22 = vpop.permute.xlu0 %1119  ;;  %v1162_v28 = vpop.permute.xlu2 %1161 }
 0x2d9   : > { %1152 = vst.msk [vmem:[%s1811_s17 + $0x173] sm:$0x1] %vm464_vm2, %v1120_v22  ;;  %v1110_v33 = vpop.permute.xlu1 %1109 }
 0x2da   : > { %1205 = vst.msk [vmem:[%s1811_s17 + $0x6c] sm:$0x1] %vm464_vm2, %v1162_v28 }
 0x2db   : > { %1147 = vst.msk [vmem:[%s1811_s17 + $0xfb] sm:$0x1] %vm464_vm2, %v1110_v33 }
 0x2de   : > { %1305 = vrot.lane.b32.xlu0 %v2443_v53, %s1689_s11  ;;  %1297 = vrot.lane.b32.xlu2 %v2381_v48, %s1689_s11 }
 0x2df   : > { %1295 = vrot.lane.b32.xlu1 %v2402_v1, %s1689_s11 }
 0x2e0   : > { %v1158_v36 = vpop.permute.xlu0 %1157  ;;  %v1168_v42 = vpop.permute.xlu2 %1167 }
 0x2e1   : > { %1203 = vst.msk [vmem:[%s1811_s17 + $0x3c] sm:$0x1] %vm464_vm2, %v1158_v36  ;;  %v1116_v43 = vpop.permute.xlu1 %1115 }
 0x2e2   : > { %1208 = vst.msk [vmem:[%s1811_s17 + $0xb4] sm:$0x1] %vm464_vm2, %v1168_v42 }
 0x2e3   : > { %1150 = vst.msk [vmem:[%s1811_s17 + $0x143] sm:$0x1] %vm464_vm2, %v1116_v43 }
 0x2e6   : > { %1311 = vrot.lane.b32.xlu0 %v2458_v40, %s1689_s11  ;;  %1303 = vrot.lane.b32.xlu2 %v2400_v0, %s1689_s11 }
 0x2e7   : > { %1301 = vrot.lane.b32.xlu1 %v2423_v8, %s1689_s11 }
 0x2e8   : > { %v1164_v55 = vpop.permute.xlu0 %1163  ;;  %v1174_v56 = vpop.permute.xlu2 %1173 }
 0x2e9   : > { %1206 = vst.msk [vmem:[%s1811_s17 + $0x84] sm:$0x1] %vm464_vm2, %v1164_v55  ;;  %v1154_v60 = vpop.permute.xlu1 %1153 }
 0x2ea   : > { %1211 = vst.msk [vmem:[%s1811_s17 + $0xfc] sm:$0x1] %vm464_vm2, %v1174_v56 }
 0x2eb   : > { %1201 = vst.msk [vmem:[%s1811_s17 + $0xc] sm:$0x1] %vm464_vm2, %v1154_v60 }
 0x2ee   : > { %1349 = vrot.lane.b32.xlu0 %v2345_v13, %s1690_s12  ;;  %1309 = vrot.lane.b32.xlu2 %v2421_v7, %s1689_s11 }
 0x2ef   : > { %1307 = vrot.lane.b32.xlu1 %v2441_v9, %s1689_s11 }
 0x2f0   : > { %v1170_v61 = vpop.permute.xlu0 %1169  ;;  %v1180_v62 = vpop.permute.xlu2 %1179 }
 0x2f1   : > { %1209 = vst.msk [vmem:[%s1811_s17 + $0xcc] sm:$0x1] %vm464_vm2, %v1170_v61  ;;  %v1160_v63 = vpop.permute.xlu1 %1159 }
 0x2f2   : > { %1214 = vst.msk [vmem:[%s1811_s17 + $0x144] sm:$0x1] %vm464_vm2, %v1180_v62 }
 0x2f3   : > { %1204 = vst.msk [vmem:[%s1811_s17 + $0x54] sm:$0x1] %vm464_vm2, %v1160_v63 }
 0x2f6   : > { %1355 = vrot.lane.b32.xlu0 %v2359_v18, %s1690_s12  ;;  %1347 = vrot.lane.b32.xlu2 %v2361_v59, %s1690_s12 }
 0x2f7   : > { %1345 = vrot.lane.b32.xlu1 %v2363_v45, %s1690_s12 }
 0x2f8   : > { %v1176_v3 = vpop.permute.xlu0 %1175  ;;  %v1218_v4 = vpop.permute.xlu2 %1217 }
 0x2f9   : > { %1212 = vst.msk [vmem:[%s1811_s17 + $0x114] sm:$0x1] %vm464_vm2, %v1176_v3  ;;  %v1166_v16 = vpop.permute.xlu1 %1165 }
 0x2fa   : > { %1265 = vst.msk [vmem:[%s1811_s17 + $0xd] sm:$0x1] %vm464_vm2, %v1218_v4 }
 0x2fb   : > { %1207 = vst.msk [vmem:[%s1811_s17 + $0x9c] sm:$0x1] %vm464_vm2, %v1166_v16 }
 0x2fe   : > { %1361 = vrot.lane.b32.xlu0 %v2381_v48, %s1690_s12  ;;  %1353 = vrot.lane.b32.xlu2 %v2383_v50, %s1690_s12 }
 0x2ff   : > { %1351 = vrot.lane.b32.xlu1 %v2385_v34, %s1690_s12 }
 0x300   : > { %v1182_v5 = vpop.permute.xlu0 %1181  ;;  %v1224_v6 = vpop.permute.xlu2 %1223 }
 0x301   : > { %1215 = vst.msk [vmem:[%s1811_s17 + $0x15c] sm:$0x1] %vm464_vm2, %v1182_v5  ;;  %v1172_v25 = vpop.permute.xlu1 %1171 }
 0x302   : > { %1268 = vst.msk [vmem:[%s1811_s17 + $0x55] sm:$0x1] %vm464_vm2, %v1224_v6 }
 0x303   : > { %1210 = vst.msk [vmem:[%s1811_s17 + $0xe4] sm:$0x1] %vm464_vm2, %v1172_v25 }
 0x306   : > { %1367 = vrot.lane.b32.xlu0 %v2400_v0, %s1690_s12  ;;  %1359 = vrot.lane.b32.xlu2 %v2402_v1, %s1690_s12 }
 0x307   : > { %1357 = vrot.lane.b32.xlu1 %v2404_v2, %s1690_s12 }
 0x308   : > { %v1220_v26 = vpop.permute.xlu0 %1219  ;;  %v1230_v29 = vpop.permute.xlu2 %1229 }
 0x309   : > { %1266 = vst.msk [vmem:[%s1811_s17 + $0x25] sm:$0x1] %vm464_vm2, %v1220_v26  ;;  %v1178_v19 = vpop.permute.xlu1 %1177 }
 0x30a   : > { %1271 = vst.msk [vmem:[%s1811_s17 + $0x9d] sm:$0x1] %vm464_vm2, %v1230_v29 }
 0x30b   : > { %1213 = vst.msk [vmem:[%s1811_s17 + $0x12c] sm:$0x1] %vm464_vm2, %v1178_v19 }
 0x30e   : > { %1373 = vrot.lane.b32.xlu0 %v2421_v7, %s1690_s12  ;;  %1365 = vrot.lane.b32.xlu2 %v2423_v8, %s1690_s12 }
 0x30f   : > { %1363 = vrot.lane.b32.xlu1 %v2425_v20, %s1690_s12 }
 0x310   : > { %v1226_v30 = vpop.permute.xlu0 %1225  ;;  %v1236_v46 = vpop.permute.xlu2 %1235 }
 0x311   : > { %1269 = vst.msk [vmem:[%s1811_s17 + $0x6d] sm:$0x1] %vm464_vm2, %v1226_v30  ;;  %v1184_v24 = vpop.permute.xlu1 %1183 }
 0x312   : > { %1274 = vst.msk [vmem:[%s1811_s17 + $0xe5] sm:$0x1] %vm464_vm2, %v1236_v46 }
 0x313   : > { %1216 = vst.msk [vmem:[%s1811_s17 + $0x174] sm:$0x1] %vm464_vm2, %v1184_v24 }
 0x316   : > { %1411 = vrot.lane.b32.xlu0 %v2361_v59, %s1691_s13  ;;  %1371 = vrot.lane.b32.xlu2 %v2441_v9, %s1690_s12 }
 0x317   : > { %1369 = vrot.lane.b32.xlu1 %v2443_v53, %s1690_s12 }
 0x318   : > { %v1232_v37 = vpop.permute.xlu0 %1231  ;;  %v1242_v10 = vpop.permute.xlu2 %1241 }
 0x319   : > { %1272 = vst.msk [vmem:[%s1811_s17 + $0xb5] sm:$0x1] %vm464_vm2, %v1232_v37  ;;  %v1222_v12 = vpop.permute.xlu1 %1221 }
 0x31a   : > { %1277 = vst.msk [vmem:[%s1811_s17 + $0x12d] sm:$0x1] %vm464_vm2, %v1242_v10 }
 0x31b   : > { %1267 = vst.msk [vmem:[%s1811_s17 + $0x3d] sm:$0x1] %vm464_vm2, %v1222_v12 }
 0x31e   : > { %1417 = vrot.lane.b32.xlu0 %v2383_v50, %s1691_s13  ;;  %1409 = vrot.lane.b32.xlu2 %v2363_v45, %s1691_s13 }
 0x31f   : > { %1375 = vrot.lane.b32.xlu1 %v2458_v40, %s1690_s12 }
 0x320   : > { %v1238_v59 = vpop.permute.xlu0 %1237  ;;  %v1248_v54 = vpop.permute.xlu2 %1247 }
 0x321   : > { %1275 = vst.msk [vmem:[%s1811_s17 + $0xfd] sm:$0x1] %vm464_vm2, %v1238_v59  ;;  %v1228_v58 = vpop.permute.xlu1 %1227 }
 0x322   : > { %1280 = vst.msk [vmem:[%s1811_s17 + $0x175] sm:$0x1] %vm464_vm2, %v1248_v54 }
 0x323   : > { %1270 = vst.msk [vmem:[%s1811_s17 + $0x85] sm:$0x1] %vm464_vm2, %v1228_v58 }
 0x326   : > { %1423 = vrot.lane.b32.xlu0 %v2402_v1, %s1691_s13  ;;  %1415 = vrot.lane.b32.xlu2 %v2385_v34, %s1691_s13 }
 0x327   : > { %1413 = vrot.lane.b32.xlu1 %v2345_v13, %s1691_s13 }
 0x328   : > { %v1244_v45 = vpop.permute.xlu0 %1243  ;;  %v1286_v50 = vpop.permute.xlu2 %1285 }
 0x329   : > { %1278 = vst.msk [vmem:[%s1811_s17 + $0x145] sm:$0x1] %vm464_vm2, %v1244_v45  ;;  %v1234_v14 = vpop.permute.xlu1 %1233 }
 0x32a   : > { %1331 = vst.msk [vmem:[%s1811_s17 + $0x3e] sm:$0x1] %vm464_vm2, %v1286_v50 }
 0x32b   : > { %1273 = vst.msk [vmem:[%s1811_s17 + $0xcd] sm:$0x1] %vm464_vm2, %v1234_v14 }
 0x32e   : > { %1429 = vrot.lane.b32.xlu0 %v2423_v8, %s1691_s13  ;;  %1421 = vrot.lane.b32.xlu2 %v2404_v2, %s1691_s13 }
 0x32f   : > { %1419 = vrot.lane.b32.xlu1 %v2359_v18, %s1691_s13 }
 0x330   : > { %v1282_v13 = vpop.permute.xlu0 %1281  ;;  %v1292_v34 = vpop.permute.xlu2 %1291 }
 0x331   : > { %1329 = vst.msk [vmem:[%s1811_s17 + $0xe] sm:$0x1] %vm464_vm2, %v1282_v13  ;;  %v1240_v1 = vpop.permute.xlu1 %1239 }
 0x332   : > { %1334 = vst.msk [vmem:[%s1811_s17 + $0x86] sm:$0x1] %vm464_vm2, %v1292_v34 }
 0x333   : > { %1276 = vst.msk [vmem:[%s1811_s17 + $0x115] sm:$0x1] %vm464_vm2, %v1240_v1 }
 0x336   : > { %1435 = vrot.lane.b32.xlu0 %v2441_v9, %s1691_s13  ;;  %1427 = vrot.lane.b32.xlu2 %v2425_v20, %s1691_s13 }
 0x337   : > { %1425 = vrot.lane.b32.xlu1 %v2381_v48, %s1691_s13 }
 0x338   : > { %v1288_v18 = vpop.permute.xlu0 %1287  ;;  %v1298_v2 = vpop.permute.xlu2 %1297 }
 0x339   : > { %1332 = vst.msk [vmem:[%s1811_s17 + $0x56] sm:$0x1] %vm464_vm2, %v1288_v18  ;;  %v1246_v8 = vpop.permute.xlu1 %1245 }
 0x33a   : > { %1337 = vst.msk [vmem:[%s1811_s17 + $0xce] sm:$0x1] %vm464_vm2, %v1298_v2 }
 0x33b   : > { %1279 = vst.msk [vmem:[%s1811_s17 + $0x15d] sm:$0x1] %vm464_vm2, %v1246_v8 }
 0x33e   : > { %1433 = vrot.lane.b32.xlu2 %v2443_v53, %s1691_s13 }
 0x33f   : > { %1431 = vrot.lane.b32.xlu1 %v2400_v0, %s1691_s13 }
 0x340   : > { %v1294_v20 = vpop.permute.xlu0 %1293  ;;  %v1304_v48 = vpop.permute.xlu2 %1303 }
 0x341   : > { %1335 = vst.msk [vmem:[%s1811_s17 + $0x9e] sm:$0x1] %vm464_vm2, %v1294_v20  ;;  %v1284_v9 = vpop.permute.xlu1 %1283 }
 0x342   : > { %1340 = vst.msk [vmem:[%s1811_s17 + $0x116] sm:$0x1] %vm464_vm2, %v1304_v48 }
 0x343   : > { %1330 = vst.msk [vmem:[%s1811_s17 + $0x26] sm:$0x1] %vm464_vm2, %v1284_v9 }
 0x346   : > { %1439 = vrot.lane.b32.xlu2 %v2458_v40, %s1691_s13 }
 0x347   : > { %1437 = vrot.lane.b32.xlu1 %v2421_v7, %s1691_s13 }
 0x348   : > { %v1300_v0 = vpop.permute.xlu0 %1299  ;;  %v1310_v53 = vpop.permute.xlu2 %1309 }
 0x349   : > { %1338 = vst.msk [vmem:[%s1811_s17 + $0xe6] sm:$0x1] %vm464_vm2, %v1300_v0  ;;  %v1290_v15 = vpop.permute.xlu1 %1289 }
 0x34a   : > { %1343 = vst.msk [vmem:[%s1811_s17 + $0x15e] sm:$0x1] %vm464_vm2, %v1310_v53 }
 0x34b   : > { %1333 = vst.msk [vmem:[%s1811_s17 + $0x6e] sm:$0x1] %vm464_vm2, %v1290_v15 }
 0x350   : > { %v1306_v21 = vpop.permute.xlu0 %1305  ;;  %v1348_v40 = vpop.permute.xlu2 %1347 }
 0x351   : > { %1341 = vst.msk [vmem:[%s1811_s17 + $0x12e] sm:$0x1] %vm464_vm2, %v1306_v21  ;;  %v1296_v7 = vpop.permute.xlu1 %1295 }
 0x352   : > { %1394 = vst.msk [vmem:[%s1811_s17 + $0x27] sm:$0x1] %vm464_vm2, %v1348_v40 }
 0x353   : > { %1336 = vst.msk [vmem:[%s1811_s17 + $0xb6] sm:$0x1] %vm464_vm2, %v1296_v7 }
 0x358   : > { %v1312_v22 = vpop.permute.xlu0 %1311  ;;  %v1354_v28 = vpop.permute.xlu2 %1353 }
 0x359   : > { %1344 = vst.msk [vmem:[%s1811_s17 + $0x176] sm:$0x1] %vm464_vm2, %v1312_v22  ;;  %v1302_v33 = vpop.permute.xlu1 %1301 }
 0x35a   : > { %1397 = vst.msk [vmem:[%s1811_s17 + $0x6f] sm:$0x1] %vm464_vm2, %v1354_v28 }
 0x35b   : > { %1339 = vst.msk [vmem:[%s1811_s17 + $0xfe] sm:$0x1] %vm464_vm2, %v1302_v33 }
 0x360   : > { %v1350_v36 = vpop.permute.xlu0 %1349  ;;  %v1360_v42 = vpop.permute.xlu2 %1359 }
 0x361   : > { %1395 = vst.msk [vmem:[%s1811_s17 + $0x3f] sm:$0x1] %vm464_vm2, %v1350_v36  ;;  %v1308_v31 = vpop.permute.xlu1 %1307 }
 0x362   : > { %1400 = vst.msk [vmem:[%s1811_s17 + $0xb7] sm:$0x1] %vm464_vm2, %v1360_v42 }
 0x363   : > { %1342 = vst.msk [vmem:[%s1811_s17 + $0x146] sm:$0x1] %vm464_vm2, %v1308_v31 }
 0x368   : > { %v1356_v32 = vpop.permute.xlu0 %1355  ;;  %v1366_v35 = vpop.permute.xlu2 %1365 }
 0x369   : > { %1398 = vst.msk [vmem:[%s1811_s17 + $0x87] sm:$0x1] %vm464_vm2, %v1356_v32  ;;  %v1346_v44 = vpop.permute.xlu1 %1345 }
 0x36a   : > { %1403 = vst.msk [vmem:[%s1811_s17 + $0xff] sm:$0x1] %vm464_vm2, %v1366_v35 }
 0x36b   : > { %1393 = vst.msk [vmem:[%s1811_s17 + $0xf] sm:$0x1] %vm464_vm2, %v1346_v44 }
 0x370   : > { %v1362_v39 = vpop.permute.xlu0 %1361  ;;  %v1372_v47 = vpop.permute.xlu2 %1371 }
 0x371   : > { %1401 = vst.msk [vmem:[%s1811_s17 + $0xcf] sm:$0x1] %vm464_vm2, %v1362_v39  ;;  %v1352_v51 = vpop.permute.xlu1 %1351 }
 0x372   : > { %1406 = vst.msk [vmem:[%s1811_s17 + $0x147] sm:$0x1] %vm464_vm2, %v1372_v47 }
 0x373   : > { %1396 = vst.msk [vmem:[%s1811_s17 + $0x57] sm:$0x1] %vm464_vm2, %v1352_v51 }
 0x378   : > { %v1368_v52 = vpop.permute.xlu0 %1367  ;;  %v1410_v11 = vpop.permute.xlu2 %1409 }
 0x379   : > { %1404 = vst.msk [vmem:[%s1811_s17 + $0x117] sm:$0x1] %vm464_vm2, %v1368_v52  ;;  %v1358_v17 = vpop.permute.xlu1 %1357 }
 0x37a   : > { %1457 = vst.msk [vmem:[%s1811_s17 + $0x10] sm:$0x1] %vm464_vm2, %v1410_v11 }
 0x37b   : > { %1399 = vst.msk [vmem:[%s1811_s17 + $0x9f] sm:$0x1] %vm464_vm2, %v1358_v17 }
 0x380   : > { %v1374_v23 = vpop.permute.xlu0 %1373  ;;  %v1416_v27 = vpop.permute.xlu2 %1415 }
 0x381   : > { %1407 = vst.msk [vmem:[%s1811_s17 + $0x15f] sm:$0x1] %vm464_vm2, %v1374_v23  ;;  %v1364_v41 = vpop.permute.xlu1 %1363 }
 0x382   : > { %1460 = vst.msk [vmem:[%s1811_s17 + $0x58] sm:$0x1] %vm464_vm2, %v1416_v27 }
 0x383   : > { %1402 = vst.msk [vmem:[%s1811_s17 + $0xe7] sm:$0x1] %vm464_vm2, %v1364_v41 }
 0x388   : > { %v1412_v38 = vpop.permute.xlu0 %1411  ;;  %v1422_v49 = vpop.permute.xlu2 %1421 }
 0x389   : > { %1458 = vst.msk [vmem:[%s1811_s17 + $0x28] sm:$0x1] %vm464_vm2, %v1412_v38  ;;  %v1370_v57 = vpop.permute.xlu1 %1369 }
 0x38a   : > { %1463 = vst.msk [vmem:[%s1811_s17 + $0xa0] sm:$0x1] %vm464_vm2, %v1422_v49 }
 0x38b   : > { %1405 = vst.msk [vmem:[%s1811_s17 + $0x12f] sm:$0x1] %vm464_vm2, %v1370_v57 }
 0x390   : > { %v1418_v43 = vpop.permute.xlu0 %1417  ;;  %v1428_v55 = vpop.permute.xlu2 %1427 }
 0x391   : > { %1461 = vst.msk [vmem:[%s1811_s17 + $0x70] sm:$0x1] %vm464_vm2, %v1418_v43  ;;  %v1376_v56 = vpop.permute.xlu1 %1375 }
 0x392   : > { %1466 = vst.msk [vmem:[%s1811_s17 + $0xe8] sm:$0x1] %vm464_vm2, %v1428_v55 }
 0x393   : > { %1408 = vst.msk [vmem:[%s1811_s17 + $0x177] sm:$0x1] %vm464_vm2, %v1376_v56 }
 0x398   : > { %v1424_v60 = vpop.permute.xlu0 %1423  ;;  %v1434_v61 = vpop.permute.xlu2 %1433 }
 0x399   : > { %1464 = vst.msk [vmem:[%s1811_s17 + $0xb8] sm:$0x1] %vm464_vm2, %v1424_v60  ;;  %v1414_v62 = vpop.permute.xlu1 %1413 }
 0x39a   : > { %1469 = vst.msk [vmem:[%s1811_s17 + $0x130] sm:$0x1] %vm464_vm2, %v1434_v61 }
 0x39b   : > { %1459 = vst.msk [vmem:[%s1811_s17 + $0x40] sm:$0x1] %vm464_vm2, %v1414_v62 }
 0x3a0   : > { %v1430_v63 = vpop.permute.xlu0 %1429  ;;  %v1440_v3 = vpop.permute.xlu2 %1439 }
 0x3a1   : > { %1467 = vst.msk [vmem:[%s1811_s17 + $0x100] sm:$0x1] %vm464_vm2, %v1430_v63  ;;  %v1420_v4 = vpop.permute.xlu1 %1419 }
 0x3a2   : > { %1472 = vst.msk [vmem:[%s1811_s17 + $0x178] sm:$0x1] %vm464_vm2, %v1440_v3 }
 0x3a3   : > { %1462 = vst.msk [vmem:[%s1811_s17 + $0x88] sm:$0x1] %vm464_vm2, %v1420_v4 }
 0x3a8   : > { %v1436_v16 = vpop.permute.xlu0 %1435 }
 0x3a9   : > { %1470 = vst.msk [vmem:[%s1811_s17 + $0x148] sm:$0x1] %vm464_vm2, %v1436_v16  ;;  %v1426_v5 = vpop.permute.xlu1 %1425 }
 0x3aa   : > { %1465 = vst.msk [vmem:[%s1811_s17 + $0xd0] sm:$0x1] %vm464_vm2, %v1426_v5 }
 0x3b1   : > { %v1432_v6 = vpop.permute.xlu1 %1431 }
 0x3b2   : > { %1468 = vst.msk [vmem:[%s1811_s17 + $0x118] sm:$0x1] %vm464_vm2, %v1432_v6 }
 0x3b9   : > { %v1438_v25 = vpop.permute.xlu1 %1437 }
 0x3ba   : > { %1471 = vst.msk [vmem:[%s1811_s17 + $0x160] sm:$0x1] %vm464_vm2, %v1438_v25 }
 0x3bb PF: > { %s15_s15 = sadd.s32 1, %s1680_s15  }
 0x3bc   : > { %p12_p7 = scmp.ge.s32.totalorder %s15_s15, 4  }
 0x3be   :  { %14 = sbr.rel (!%p12_p7) target bundleno = 1 (0x1), region = 86 }
 0x3c3   :  { %1494 = vsyncpa [#allocation3], 1 }
 0x3c4   :  { %1496 = vsyncpa [#allocation3 + $0x1], 1 }

</bundles_post_ra>
